<compile_context>
chip_gen: v7x
topology: tpu7x:2x2x1
jax: 0.10.0
libtpu: 0.0.40
codegen_flags: <defaults>
</compile_context>

<pallas_src>
import functools
import math

import jax
import jax.numpy as jnp
from jax.experimental import pallas as pl
from jax.experimental.pallas import tpu as pltpu

# ----------------------------------------------------------------------------
# Small synthetic CLIP configuration (shapes consistent with the module).
# ----------------------------------------------------------------------------
TEXT_CFG = dict(vocab_size=64, hidden=32, heads=4, layers=2, intermediate=64,
                max_pos=8)
VISION_CFG = dict(image_size=16, patch_size=8, channels=3, hidden=32, heads=4,
                  layers=2, intermediate=64)
PROJ_DIM = 16
LN_EPS = 1e-5
NEG_INF = -1e9


# ----------------------------------------------------------------------------
# In-kernel helpers (traced Python)
# ----------------------------------------------------------------------------
def _ln(x, g, b, eps=LN_EPS):
    mean = jnp.mean(x, axis=-1, keepdims=True)
    xc = x - mean
    var = jnp.mean(xc * xc, axis=-1, keepdims=True)
    return xc * jax.lax.rsqrt(var + eps) * g + b


# ----------------------------------------------------------------------------
# The fused dual-tower kernel (grid=(2,): 0 = text, 1 = vision)
# ----------------------------------------------------------------------------
def _clip_dual_tower_kernel(eos_ref, len_ref, x_ref, w_ref, v_ref, head_ref,
                            out_ref, *, batch, seq, vis_seq, heads, layers,
                            inter):
    H = x_ref.shape[-1]
    BS = batch * seq                      # folded-batch row count
    D = H // heads
    R = heads * BS                        # head-stacked row count
    scale = D ** -0.5

    t = pl.program_id(0)
    vis_i = (t == 1).astype(jnp.int32)    # 0 = text tower, 1 = vision tower
    vis_f = vis_i.astype(jnp.float32)

    head = head_ref[0]                    # (H+5, H)
    proj_w = head[0:H, :]                 # (H, H) zero-padded projection
    proj_b = head[H:H + 1, :]
    pre_g, pre_b = head[H + 1:H + 2, :], head[H + 2:H + 3, :]
    out_g, out_b = head[H + 3:H + 4, :], head[H + 4:H + 5, :]

    x = x_ref[0]                          # (BS, H) f32
    # vision-only pre_layernorm (arithmetic blend; text keeps x unchanged)
    x = x + vis_f * (_ln(x, pre_g, pre_b) - x)

    # Block-diagonal (head, example) keep-mask, causal for the text tower,
    # key-padding via valid length (text) / static real length (vision).
    ri = jax.lax.broadcasted_iota(jnp.int32, (R, R), 0)
    ci = jax.lax.broadcasted_iota(jnp.int32, (R, R), 1)
    causal_ok = ci <= ri + vis_i * seq    # vision: always true inside a block
    keep = ri < 0                         # all-False init
    for h in range(heads):
        for b in range(batch):
            lo = h * BS + b * seq
            klen = vis_i * vis_seq + (1 - vis_i) * len_ref[b]
            blk = (ri >= lo) & (ri < lo + seq) & (ci >= lo) & (ci < lo + klen)
            keep = keep | (blk & causal_ok)

    for l in range(layers):               # static unroll (L = 2)
        wl = w_ref[0, l]                  # (H, 4H + 2I)
        vl = v_ref[0, l]                  # (6, 3H)
        qkv_w = wl[:, 0:3 * H]
        o_w = wl[:, 3 * H:4 * H]
        fc1_w = wl[:, 4 * H:4 * H + inter]
        fc2_wt = wl[:, 4 * H + inter:4 * H + 2 * inter]      # fc2_w transposed
        qkv_b = vl[0:1, 0:3 * H]
        o_b = vl[1:2, 0:H]
        fc1_b = vl[2:3, 0:inter]
        fc2_b = vl[3:4, 0:H]
        ln1_g, ln1_b = vl[4:5, 0:H], vl[4:5, H:2 * H]
        ln2_g, ln2_b = vl[5:6, 0:H], vl[5:6, H:2 * H]

        # ---- attention (heads batched by sublane-stacking) ----
        residual = x
        xn = _ln(x, ln1_g, ln1_b)
        qkv = jnp.dot(xn, qkv_w, preferred_element_type=jnp.float32) + qkv_b
        q_st = jnp.concatenate(
            [qkv[:, h * D:(h + 1) * D] for h in range(heads)], axis=0) * scale
        k_st = jnp.concatenate(
            [qkv[:, H + h * D:H + (h + 1) * D] for h in range(heads)], axis=0)
        v_st = jnp.concatenate(
            [qkv[:, 2 * H + h * D:2 * H + (h + 1) * D] for h in range(heads)],
            axis=0)                                           # (R, D) each
        s = jax.lax.dot_general(q_st, k_st, (((1,), (1,)), ((), ())),
                                preferred_element_type=jnp.float32)  # (R, R)
        s = jnp.where(keep, s, NEG_INF)
        s = s - jnp.max(s, axis=-1, keepdims=True)
        p = jnp.exp(s)
        p = p / jnp.sum(p, axis=-1, keepdims=True)
        o_st = jnp.dot(p, v_st, preferred_element_type=jnp.float32)  # (R, D)
        attn = jnp.concatenate(
            [o_st[h * BS:(h + 1) * BS, :] for h in range(heads)], axis=1)
        x = residual + jnp.dot(attn, o_w,
                               preferred_element_type=jnp.float32) + o_b

        # ---- MLP with quick_gelu ----
        residual = x
        xn = _ln(x, ln2_g, ln2_b)
        y = jnp.dot(xn, fc1_w, preferred_element_type=jnp.float32) + fc1_b
        y = y * jax.nn.sigmoid(1.702 * y)
        mlp = jax.lax.dot_general(y, fc2_wt, (((1,), (1,)), ((), ())),
                                  preferred_element_type=jnp.float32) + fc2_b
        x = residual + mlp

    # ---- pooling: text -> EOS (argmax) row, vision -> CLS (row 0) ----
    rows = jax.lax.broadcasted_iota(jnp.int32, (BS, 1), 0)
    pooled_rows = []
    for b in range(batch):
        row_idx = b * seq + (1 - vis_i) * eos_ref[b]
        sel = (rows == row_idx).astype(jnp.float32)           # (BS, 1)
        pooled_rows.append(jnp.sum(sel * x, axis=0, keepdims=True))
    pooled = jnp.concatenate(pooled_rows, axis=0)             # (B, H)

    # text final_layer_norm / vision post_layernorm (row-wise, so pooling
    # first then LN is mathematically identical to LN-then-pool).
    pooled = _ln(pooled, out_g, out_b)
    feats = jnp.dot(pooled, proj_w,
                    preferred_element_type=jnp.float32) + proj_b  # (B, H)
    # padded projection columns are exactly 0 -> L2 norm equals the real norm
    feats = feats * jax.lax.rsqrt(jnp.sum(feats * feats, axis=-1,
                                          keepdims=True))
    out_ref[0] = feats[:, 0:out_ref.shape[-1]].astype(out_ref.dtype)


# ----------------------------------------------------------------------------
# Parameter packing into slabs (fewer DMA descriptors per review)
# ----------------------------------------------------------------------------
def _pack_layers(p, hidden):
    """-> weight slab (L, H, 4H+2I) and vector slab (L, 6, 3H)."""
    w = jnp.concatenate([p["qkv_w"], p["o_w"], p["fc1_w"],
                         jnp.swapaxes(p["fc2_w"], 1, 2)], axis=2)
    wv = 3 * hidden

    def row(v):
        return jnp.pad(v, ((0, 0), (0, wv - v.shape[-1])))[:, None, :]

    vec = jnp.concatenate([
        row(p["qkv_b"]), row(p["o_b"]), row(p["fc1_b"]), row(p["fc2_b"]),
        row(jnp.concatenate([p["ln1_g"], p["ln1_b"]], axis=-1)),
        row(jnp.concatenate([p["ln2_g"], p["ln2_b"]], axis=-1)),
    ], axis=1)
    return w, vec


def _pack_head(pre_g, pre_b, out_g, out_b, proj_w, proj_b, hidden):
    pw = jnp.pad(proj_w, ((0, 0), (0, hidden - proj_w.shape[-1])))
    pb = jnp.pad(proj_b, (0, hidden - proj_b.shape[-1]))[None, :]
    return jnp.concatenate([pw, pb, pre_g[None, :], pre_b[None, :],
                            out_g[None, :], out_b[None, :]], axis=0)  # (H+5, H)


# ----------------------------------------------------------------------------
# Deterministic synthetic parameter initialization (no checkpoint)
# ----------------------------------------------------------------------------
def _dense(key, shape, scale=0.02):
    return scale * jax.random.normal(key, shape, jnp.float32)


def _init_layer_stack(key, num_layers, hidden, inter):
    names = ("qkv_w", "o_w", "fc1_w", "fc2_w", "qkv_b", "o_b", "fc1_b",
             "fc2_b", "ln1_g", "ln1_b", "ln2_g", "ln2_b")
    cols = {n: [] for n in names}
    for k in jax.random.split(key, num_layers):
        ks = jax.random.split(k, 6)
        cols["qkv_w"].append(jnp.concatenate(
            [_dense(ks[0], (hidden, hidden)),
             _dense(ks[1], (hidden, hidden)),
             _dense(ks[2], (hidden, hidden))], axis=1))
        cols["o_w"].append(_dense(ks[3], (hidden, hidden)))
        cols["fc1_w"].append(_dense(ks[4], (hidden, inter)))
        cols["fc2_w"].append(_dense(ks[5], (inter, hidden)))
        cols["qkv_b"].append(jnp.zeros((3 * hidden,), jnp.float32))
        cols["o_b"].append(jnp.zeros((hidden,), jnp.float32))
        cols["fc1_b"].append(jnp.zeros((inter,), jnp.float32))
        cols["fc2_b"].append(jnp.zeros((hidden,), jnp.float32))
        cols["ln1_g"].append(jnp.ones((hidden,), jnp.float32))
        cols["ln1_b"].append(jnp.zeros((hidden,), jnp.float32))
        cols["ln2_g"].append(jnp.ones((hidden,), jnp.float32))
        cols["ln2_b"].append(jnp.zeros((hidden,), jnp.float32))
    return {n: jnp.stack(v) for n, v in cols.items()}


def init_params(key):
    kt, kv, ktp, kvp = jax.random.split(key, 4)
    tcfg, vcfg = TEXT_CFG, VISION_CFG
    kt1, kt2, kt3 = jax.random.split(kt, 3)
    text = dict(
        token_embedding=_dense(kt1, (tcfg["vocab_size"], tcfg["hidden"])),
        position_embedding=_dense(kt2, (tcfg["max_pos"], tcfg["hidden"])),
        layers=_init_layer_stack(kt3, tcfg["layers"], tcfg["hidden"],
                                 tcfg["intermediate"]),
        final_ln_g=jnp.ones((tcfg["hidden"],), jnp.float32),
        final_ln_b=jnp.zeros((tcfg["hidden"],), jnp.float32),
    )
    num_pos = (vcfg["image_size"] // vcfg["patch_size"]) ** 2 + 1
    kv1, kv2, kv3, kv4 = jax.random.split(kv, 4)
    vision = dict(
        patch_embedding=_dense(kv1, (vcfg["hidden"], vcfg["channels"],
                                     vcfg["patch_size"], vcfg["patch_size"])),
        class_embedding=_dense(kv2, (vcfg["hidden"],)),
        position_embedding=_dense(kv3, (num_pos, vcfg["hidden"])),
        pre_ln_g=jnp.ones((vcfg["hidden"],), jnp.float32),
        pre_ln_b=jnp.zeros((vcfg["hidden"],), jnp.float32),
        post_ln_g=jnp.ones((vcfg["hidden"],), jnp.float32),
        post_ln_b=jnp.zeros((vcfg["hidden"],), jnp.float32),
        layers=_init_layer_stack(kv4, vcfg["layers"], vcfg["hidden"],
                                 vcfg["intermediate"]),
    )
    return dict(
        text=text, vision=vision,
        text_projection_w=_dense(ktp, (tcfg["hidden"], PROJ_DIM)),
        text_projection_b=jnp.zeros((PROJ_DIM,), jnp.float32),
        vision_projection_w=_dense(kvp, (vcfg["hidden"], PROJ_DIM)),
        vision_projection_b=jnp.zeros((PROJ_DIM,), jnp.float32),
        logit_scale=jnp.asarray(math.log(1.0 / 0.07), jnp.float32),
    )


# ----------------------------------------------------------------------------
# Model forward: one fused Pallas call, tiny JAX glue around it
# ----------------------------------------------------------------------------
def clip_forward(params, input_ids, attention_mask, pixel_values):
    tcfg, vcfg = TEXT_CFG, VISION_CFG
    B, s_text = input_ids.shape
    H = tcfg["hidden"]
    L = tcfg["layers"]
    inter = tcfg["intermediate"]
    P = vcfg["patch_size"]
    C = vcfg["channels"]
    nside = vcfg["image_size"] // P
    n_patch = nside * nside
    vis_seq = n_patch + 1
    seq = max(s_text, vis_seq)          # common per-example slot count
    BS = B * seq

    tp, vp = params["text"], params["vision"]

    # ---- text embeddings (token gather in glue) ----
    emb_t = tp["token_embedding"][input_ids] + \
        tp["position_embedding"][None, :s_text, :]
    emb_t = jnp.pad(emb_t, ((0, 0), (0, seq - s_text), (0, 0)))
    t_x0 = emb_t.reshape(BS, H)

    # ---- vision embeddings (patch unfold + patch matmul in glue) ----
    patches = pixel_values.reshape(B, C, nside, P, nside, P)
    patches = patches.transpose(0, 2, 4, 1, 3, 5).reshape(B, n_patch, C * P * P)
    patch_w = vp["patch_embedding"].reshape(H, C * P * P).T
    pe = jnp.dot(patches, patch_w)                                    # (B, NP, H)
    cls = jnp.broadcast_to(vp["class_embedding"][None, None, :], (B, 1, H))
    emb_v = jnp.concatenate([cls, pe], axis=1) + \
        vp["position_embedding"][None, :vis_seq, :]
    emb_v = jnp.pad(emb_v, ((0, 0), (0, seq - vis_seq), (0, 0)))
    v_x0 = emb_v.reshape(BS, H)

    x0 = jnp.stack([t_x0, v_x0], axis=0)                              # (2, BS, H)

    # ---- packed, tower-stacked parameter slabs ----
    t_w, t_v = _pack_layers(tp["layers"], H)
    v_w, v_v = _pack_layers(vp["layers"], H)
    w_all = jnp.stack([t_w, v_w], axis=0)                             # (2, L, H, 4H+2I)
    v_all = jnp.stack([t_v, v_v], axis=0)                             # (2, L, 6, 3H)
    ones = jnp.ones((H,), jnp.float32)
    zeros = jnp.zeros((H,), jnp.float32)
    head_all = jnp.stack([
        _pack_head(ones, zeros, tp["final_ln_g"], tp["final_ln_b"],
                   params["text_projection_w"], params["text_projection_b"], H),
        _pack_head(vp["pre_ln_g"], vp["pre_ln_b"], vp["post_ln_g"],
                   vp["post_ln_b"], params["vision_projection_w"],
                   params["vision_projection_b"], H),
    ], axis=0)                                                        # (2, H+5, H)

    # ---- scalar prefetch: EOS index + valid length per example ----
    eos_idx = jnp.argmax(input_ids, axis=-1).astype(jnp.int32)
    # TODO(synk): non-contiguous attention masks collapse to a prefix length here.
    valid_len = jnp.sum(attention_mask.astype(jnp.int32), axis=-1)

    kernel = functools.partial(
        _clip_dual_tower_kernel, batch=B, seq=seq, vis_seq=vis_seq,
        heads=tcfg["heads"], layers=L, inter=inter)

    grid_spec = pltpu.PrefetchScalarGridSpec(
        num_scalar_prefetch=2,
        grid=(2,),
        in_specs=[
            pl.BlockSpec((1, BS, H), lambda t, *_: (t, 0, 0)),
            pl.BlockSpec((1, L, H, 4 * H + 2 * inter),
                         lambda t, *_: (t, 0, 0, 0)),
            pl.BlockSpec((1, L, 6, 3 * H), lambda t, *_: (t, 0, 0, 0)),
            pl.BlockSpec((1, H + 5, H), lambda t, *_: (t, 0, 0)),
        ],
        out_specs=pl.BlockSpec((1, B, PROJ_DIM), lambda t, *_: (t, 0, 0)),
    )
    feats = pl.pallas_call(
        kernel,
        out_shape=jax.ShapeDtypeStruct((2, B, PROJ_DIM), jnp.float32),
        grid_spec=grid_spec,
        compiler_params=pltpu.CompilerParams(
            dimension_semantics=("parallel",)),   # text & vision towers run
    )(eos_idx, valid_len, x0, w_all, v_all, head_all)  # concurrently on v7x

    text_features = feats[0]
    vision_features = feats[1]
    logit_scale = jnp.exp(params["logit_scale"])
    return text_features, vision_features, logit_scale


# ----------------------------------------------------------------------------
if __name__ == "__main__":
    key = jax.random.PRNGKey(0)
    k_params, k_ids, k_pix = jax.random.split(key, 3)

    params = init_params(k_params)

    B, S = 2, TEXT_CFG["max_pos"]
    input_ids = jax.random.randint(k_ids, (B, S), 0, TEXT_CFG["vocab_size"],
                                   dtype=jnp.int32)
    attention_mask = jnp.ones((B, S), jnp.int32).at[1, -2:].set(0)
    pixel_values = jax.random.normal(
        k_pix, (B, VISION_CFG["channels"], VISION_CFG["image_size"],
                VISION_CFG["image_size"]), jnp.float32)

    fwd = jax.jit(clip_forward)
    text_features, vision_features, logit_scale = fwd(
        params, input_ids, attention_mask, pixel_values)
    jax.block_until_ready((text_features, vision_features, logit_scale))

    assert text_features.shape == (B, PROJ_DIM)
    assert vision_features.shape == (B, PROJ_DIM)
    assert bool(jnp.all(jnp.isfinite(text_features)))
    assert bool(jnp.all(jnp.isfinite(vision_features)))
    assert bool(jnp.isfinite(logit_scale))
    print("KERNEL_OK")
</pallas_src>

<mosaic_0001>
module attributes {stable_mosaic.version = 11 : i64} {
  func.func @_clip_dual_tower_kernel(%arg0: i32, %arg1: memref<2xi32, #tpu.memory_space<smem>>, %arg2: memref<2xi32, #tpu.memory_space<smem>>, %arg3: memref<1x16x32xf32, #tpu.memory_space<vmem>>, %arg4: memref<1x2x32x256xf32, #tpu.memory_space<vmem>>, %arg5: memref<1x2x6x96xf32, #tpu.memory_space<vmem>>, %arg6: memref<1x37x32xf32, #tpu.memory_space<vmem>>, %arg7: memref<1x2x16xf32, #tpu.memory_space<vmem>>) attributes {dimension_semantics = [#tpu.dimension_semantics<parallel>], iteration_bounds = array<i64: 2>, scalar_prefetch = 2 : i64, scratch_operands = 0 : i64, tpu.core_type = #tpu.core_type<tc>, window_params = [{transform_indices = @transform_0, window_bounds = array<i64: 1, 16, 32>}, {transform_indices = @transform_1, window_bounds = array<i64: 1, 2, 32, 256>}, {transform_indices = @transform_2, window_bounds = array<i64: 1, 2, 6, 96>}, {transform_indices = @transform_3, window_bounds = array<i64: 1, 37, 32>}, {transform_indices = @transform_4, window_bounds = array<i64: 1, 2, 16>}]} {
    %c1_i32 = arith.constant 1 : i32
    %0 = arith.cmpi eq, %arg0, %c1_i32 : i32
    %1 = arith.extui %0 : i1 to i32
    %2 = arith.sitofp %1 : i32 to f32
    %c0 = arith.constant 0 : index
    %c0_0 = arith.constant 0 : index
    %c0_1 = arith.constant 0 : index
    %3 = vector.load %arg6[%c0, %c0_0, %c0_1] : memref<1x37x32xf32, #tpu.memory_space<vmem>>, vector<1x37x32xf32>
    %4 = vector.shape_cast %3 : vector<1x37x32xf32> to vector<37x32xf32>
    %5 = vector.extract_strided_slice %4 {offsets = [0, 0], sizes = [32, 32], strides = [1, 1]} : vector<37x32xf32> to vector<32x32xf32>
    %6 = vector.extract_strided_slice %4 {offsets = [32, 0], sizes = [1, 32], strides = [1, 1]} : vector<37x32xf32> to vector<1x32xf32>
    %7 = vector.extract_strided_slice %4 {offsets = [33, 0], sizes = [1, 32], strides = [1, 1]} : vector<37x32xf32> to vector<1x32xf32>
    %8 = vector.extract_strided_slice %4 {offsets = [34, 0], sizes = [1, 32], strides = [1, 1]} : vector<37x32xf32> to vector<1x32xf32>
    %9 = vector.extract_strided_slice %4 {offsets = [35, 0], sizes = [1, 32], strides = [1, 1]} : vector<37x32xf32> to vector<1x32xf32>
    %10 = vector.extract_strided_slice %4 {offsets = [36, 0], sizes = [1, 32], strides = [1, 1]} : vector<37x32xf32> to vector<1x32xf32>
    %c0_2 = arith.constant 0 : index
    %c0_3 = arith.constant 0 : index
    %c0_4 = arith.constant 0 : index
    %11 = vector.load %arg3[%c0_2, %c0_3, %c0_4] : memref<1x16x32xf32, #tpu.memory_space<vmem>>, vector<1x16x32xf32>
    %12 = vector.shape_cast %11 : vector<1x16x32xf32> to vector<16x32xf32>
    %cst = arith.constant dense<0.000000e+00> : vector<16xf32>
    %13 = vector.multi_reduction <add>, %12, %cst [1] : vector<16x32xf32> to vector<16xf32>
    %14 = vector.shape_cast %13 : vector<16xf32> to vector<16x1xf32>
    %cst_5 = arith.constant 3.200000e+01 : f32
    %15 = vector.broadcast %cst_5 : f32 to vector<16x1xf32>
    %16 = arith.divf %14, %15 : vector<16x1xf32>
    %17 = vector.broadcast %16 : vector<16x1xf32> to vector<16x32xf32>
    %18 = arith.subf %12, %17 : vector<16x32xf32>
    %19 = arith.mulf %18, %18 : vector<16x32xf32>
    %cst_6 = arith.constant dense<0.000000e+00> : vector<16xf32>
    %20 = vector.multi_reduction <add>, %19, %cst_6 [1] : vector<16x32xf32> to vector<16xf32>
    %21 = vector.shape_cast %20 : vector<16xf32> to vector<16x1xf32>
    %cst_7 = arith.constant 3.200000e+01 : f32
    %22 = vector.broadcast %cst_7 : f32 to vector<16x1xf32>
    %23 = arith.divf %21, %22 : vector<16x1xf32>
    %cst_8 = arith.constant 9.99999974E-6 : f32
    %24 = vector.broadcast %cst_8 : f32 to vector<16x1xf32>
    %25 = arith.addf %23, %24 : vector<16x1xf32>
    %26 = math.rsqrt %25 : vector<16x1xf32>
    %27 = vector.broadcast %26 : vector<16x1xf32> to vector<16x32xf32>
    %28 = arith.mulf %18, %27 : vector<16x32xf32>
    %29 = vector.broadcast %7 : vector<1x32xf32> to vector<16x32xf32>
    %30 = arith.mulf %28, %29 : vector<16x32xf32>
    %31 = vector.broadcast %8 : vector<1x32xf32> to vector<16x32xf32>
    %32 = arith.addf %30, %31 : vector<16x32xf32>
    %33 = arith.subf %32, %12 : vector<16x32xf32>
    %34 = vector.broadcast %2 : f32 to vector<16x32xf32>
    %35 = arith.mulf %34, %33 : vector<16x32xf32>
    %36 = arith.addf %12, %35 : vector<16x32xf32>
    %37 = tpu.iota {dimensions = array<i32: 0>} : vector<64x64xi32>
    %38 = tpu.iota {dimensions = array<i32: 1>} : vector<64x64xi32>
    %c8_i32 = arith.constant 8 : i32
    %39 = arith.muli %1, %c8_i32 : i32
    %40 = vector.broadcast %39 : i32 to vector<64x64xi32>
    %41 = arith.addi %37, %40 : vector<64x64xi32>
    %42 = arith.cmpi sle, %38, %41 : vector<64x64xi32>
    %c0_i32 = arith.constant 0 : i32
    %43 = vector.broadcast %c0_i32 : i32 to vector<64x64xi32>
    %44 = arith.cmpi slt, %37, %43 : vector<64x64xi32>
    %c5_i32 = arith.constant 5 : i32
    %45 = arith.muli %1, %c5_i32 : i32
    %c1_i32_9 = arith.constant 1 : i32
    %46 = arith.subi %c1_i32_9, %1 : i32
    %c0_10 = arith.constant 0 : index
    %47 = memref.load %arg2[%c0_10] : memref<2xi32, #tpu.memory_space<smem>>
    %48 = arith.muli %46, %47 : i32
    %49 = arith.addi %45, %48 : i32
    %c0_i32_11 = arith.constant 0 : i32
    %50 = vector.broadcast %c0_i32_11 : i32 to vector<64x64xi32>
    %51 = arith.cmpi sge, %37, %50 : vector<64x64xi32>
    %c8_i32_12 = arith.constant 8 : i32
    %52 = vector.broadcast %c8_i32_12 : i32 to vector<64x64xi32>
    %53 = arith.cmpi slt, %37, %52 : vector<64x64xi32>
    %54 = arith.andi %51, %53 : vector<64x64xi1>
    %c0_i32_13 = arith.constant 0 : i32
    %55 = vector.broadcast %c0_i32_13 : i32 to vector<64x64xi32>
    %56 = arith.cmpi sge, %38, %55 : vector<64x64xi32>
    %57 = arith.andi %54, %56 : vector<64x64xi1>
    %c0_i32_14 = arith.constant 0 : i32
    %58 = arith.addi %c0_i32_14, %49 : i32
    %59 = vector.broadcast %58 : i32 to vector<64x64xi32>
    %60 = arith.cmpi slt, %38, %59 : vector<64x64xi32>
    %61 = arith.andi %57, %60 : vector<64x64xi1>
    %62 = arith.andi %61, %42 : vector<64x64xi1>
    %63 = arith.ori %44, %62 : vector<64x64xi1>
    %c5_i32_15 = arith.constant 5 : i32
    %64 = arith.muli %1, %c5_i32_15 : i32
    %c1_i32_16 = arith.constant 1 : i32
    %65 = arith.subi %c1_i32_16, %1 : i32
    %c1 = arith.constant 1 : index
    %66 = memref.load %arg2[%c1] : memref<2xi32, #tpu.memory_space<smem>>
    %67 = arith.muli %65, %66 : i32
    %68 = arith.addi %64, %67 : i32
    %c8_i32_17 = arith.constant 8 : i32
    %69 = vector.broadcast %c8_i32_17 : i32 to vector<64x64xi32>
    %70 = arith.cmpi sge, %37, %69 : vector<64x64xi32>
    %c16_i32 = arith.constant 16 : i32
    %71 = vector.broadcast %c16_i32 : i32 to vector<64x64xi32>
    %72 = arith.cmpi slt, %37, %71 : vector<64x64xi32>
    %73 = arith.andi %70, %72 : vector<64x64xi1>
    %c8_i32_18 = arith.constant 8 : i32
    %74 = vector.broadcast %c8_i32_18 : i32 to vector<64x64xi32>
    %75 = arith.cmpi sge, %38, %74 : vector<64x64xi32>
    %76 = arith.andi %73, %75 : vector<64x64xi1>
    %c8_i32_19 = arith.constant 8 : i32
    %77 = arith.addi %c8_i32_19, %68 : i32
    %78 = vector.broadcast %77 : i32 to vector<64x64xi32>
    %79 = arith.cmpi slt, %38, %78 : vector<64x64xi32>
    %80 = arith.andi %76, %79 : vector<64x64xi1>
    %81 = arith.andi %80, %42 : vector<64x64xi1>
    %82 = arith.ori %63, %81 : vector<64x64xi1>
    %c5_i32_20 = arith.constant 5 : i32
    %83 = arith.muli %1, %c5_i32_20 : i32
    %c1_i32_21 = arith.constant 1 : i32
    %84 = arith.subi %c1_i32_21, %1 : i32
    %c0_22 = arith.constant 0 : index
    %85 = memref.load %arg2[%c0_22] : memref<2xi32, #tpu.memory_space<smem>>
    %86 = arith.muli %84, %85 : i32
    %87 = arith.addi %83, %86 : i32
    %c16_i32_23 = arith.constant 16 : i32
    %88 = vector.broadcast %c16_i32_23 : i32 to vector<64x64xi32>
    %89 = arith.cmpi sge, %37, %88 : vector<64x64xi32>
    %c24_i32 = arith.constant 24 : i32
    %90 = vector.broadcast %c24_i32 : i32 to vector<64x64xi32>
    %91 = arith.cmpi slt, %37, %90 : vector<64x64xi32>
    %92 = arith.andi %89, %91 : vector<64x64xi1>
    %c16_i32_24 = arith.constant 16 : i32
    %93 = vector.broadcast %c16_i32_24 : i32 to vector<64x64xi32>
    %94 = arith.cmpi sge, %38, %93 : vector<64x64xi32>
    %95 = arith.andi %92, %94 : vector<64x64xi1>
    %c16_i32_25 = arith.constant 16 : i32
    %96 = arith.addi %c16_i32_25, %87 : i32
    %97 = vector.broadcast %96 : i32 to vector<64x64xi32>
    %98 = arith.cmpi slt, %38, %97 : vector<64x64xi32>
    %99 = arith.andi %95, %98 : vector<64x64xi1>
    %100 = arith.andi %99, %42 : vector<64x64xi1>
    %101 = arith.ori %82, %100 : vector<64x64xi1>
    %c5_i32_26 = arith.constant 5 : i32
    %102 = arith.muli %1, %c5_i32_26 : i32
    %c1_i32_27 = arith.constant 1 : i32
    %103 = arith.subi %c1_i32_27, %1 : i32
    %c1_28 = arith.constant 1 : index
    %104 = memref.load %arg2[%c1_28] : memref<2xi32, #tpu.memory_space<smem>>
    %105 = arith.muli %103, %104 : i32
    %106 = arith.addi %102, %105 : i32
    %c24_i32_29 = arith.constant 24 : i32
    %107 = vector.broadcast %c24_i32_29 : i32 to vector<64x64xi32>
    %108 = arith.cmpi sge, %37, %107 : vector<64x64xi32>
    %c32_i32 = arith.constant 32 : i32
    %109 = vector.broadcast %c32_i32 : i32 to vector<64x64xi32>
    %110 = arith.cmpi slt, %37, %109 : vector<64x64xi32>
    %111 = arith.andi %108, %110 : vector<64x64xi1>
    %c24_i32_30 = arith.constant 24 : i32
    %112 = vector.broadcast %c24_i32_30 : i32 to vector<64x64xi32>
    %113 = arith.cmpi sge, %38, %112 : vector<64x64xi32>
    %114 = arith.andi %111, %113 : vector<64x64xi1>
    %c24_i32_31 = arith.constant 24 : i32
    %115 = arith.addi %c24_i32_31, %106 : i32
    %116 = vector.broadcast %115 : i32 to vector<64x64xi32>
    %117 = arith.cmpi slt, %38, %116 : vector<64x64xi32>
    %118 = arith.andi %114, %117 : vector<64x64xi1>
    %119 = arith.andi %118, %42 : vector<64x64xi1>
    %120 = arith.ori %101, %119 : vector<64x64xi1>
    %c5_i32_32 = arith.constant 5 : i32
    %121 = arith.muli %1, %c5_i32_32 : i32
    %c1_i32_33 = arith.constant 1 : i32
    %122 = arith.subi %c1_i32_33, %1 : i32
    %c0_34 = arith.constant 0 : index
    %123 = memref.load %arg2[%c0_34] : memref<2xi32, #tpu.memory_space<smem>>
    %124 = arith.muli %122, %123 : i32
    %125 = arith.addi %121, %124 : i32
    %c32_i32_35 = arith.constant 32 : i32
    %126 = vector.broadcast %c32_i32_35 : i32 to vector<64x64xi32>
    %127 = arith.cmpi sge, %37, %126 : vector<64x64xi32>
    %c40_i32 = arith.constant 40 : i32
    %128 = vector.broadcast %c40_i32 : i32 to vector<64x64xi32>
    %129 = arith.cmpi slt, %37, %128 : vector<64x64xi32>
    %130 = arith.andi %127, %129 : vector<64x64xi1>
    %c32_i32_36 = arith.constant 32 : i32
    %131 = vector.broadcast %c32_i32_36 : i32 to vector<64x64xi32>
    %132 = arith.cmpi sge, %38, %131 : vector<64x64xi32>
    %133 = arith.andi %130, %132 : vector<64x64xi1>
    %c32_i32_37 = arith.constant 32 : i32
    %134 = arith.addi %c32_i32_37, %125 : i32
    %135 = vector.broadcast %134 : i32 to vector<64x64xi32>
    %136 = arith.cmpi slt, %38, %135 : vector<64x64xi32>
    %137 = arith.andi %133, %136 : vector<64x64xi1>
    %138 = arith.andi %137, %42 : vector<64x64xi1>
    %139 = arith.ori %120, %138 : vector<64x64xi1>
    %c5_i32_38 = arith.constant 5 : i32
    %140 = arith.muli %1, %c5_i32_38 : i32
    %c1_i32_39 = arith.constant 1 : i32
    %141 = arith.subi %c1_i32_39, %1 : i32
    %c1_40 = arith.constant 1 : index
    %142 = memref.load %arg2[%c1_40] : memref<2xi32, #tpu.memory_space<smem>>
    %143 = arith.muli %141, %142 : i32
    %144 = arith.addi %140, %143 : i32
    %c40_i32_41 = arith.constant 40 : i32
    %145 = vector.broadcast %c40_i32_41 : i32 to vector<64x64xi32>
    %146 = arith.cmpi sge, %37, %145 : vector<64x64xi32>
    %c48_i32 = arith.constant 48 : i32
    %147 = vector.broadcast %c48_i32 : i32 to vector<64x64xi32>
    %148 = arith.cmpi slt, %37, %147 : vector<64x64xi32>
    %149 = arith.andi %146, %148 : vector<64x64xi1>
    %c40_i32_42 = arith.constant 40 : i32
    %150 = vector.broadcast %c40_i32_42 : i32 to vector<64x64xi32>
    %151 = arith.cmpi sge, %38, %150 : vector<64x64xi32>
    %152 = arith.andi %149, %151 : vector<64x64xi1>
    %c40_i32_43 = arith.constant 40 : i32
    %153 = arith.addi %c40_i32_43, %144 : i32
    %154 = vector.broadcast %153 : i32 to vector<64x64xi32>
    %155 = arith.cmpi slt, %38, %154 : vector<64x64xi32>
    %156 = arith.andi %152, %155 : vector<64x64xi1>
    %157 = arith.andi %156, %42 : vector<64x64xi1>
    %158 = arith.ori %139, %157 : vector<64x64xi1>
    %c5_i32_44 = arith.constant 5 : i32
    %159 = arith.muli %1, %c5_i32_44 : i32
    %c1_i32_45 = arith.constant 1 : i32
    %160 = arith.subi %c1_i32_45, %1 : i32
    %c0_46 = arith.constant 0 : index
    %161 = memref.load %arg2[%c0_46] : memref<2xi32, #tpu.memory_space<smem>>
    %162 = arith.muli %160, %161 : i32
    %163 = arith.addi %159, %162 : i32
    %c48_i32_47 = arith.constant 48 : i32
    %164 = vector.broadcast %c48_i32_47 : i32 to vector<64x64xi32>
    %165 = arith.cmpi sge, %37, %164 : vector<64x64xi32>
    %c56_i32 = arith.constant 56 : i32
    %166 = vector.broadcast %c56_i32 : i32 to vector<64x64xi32>
    %167 = arith.cmpi slt, %37, %166 : vector<64x64xi32>
    %168 = arith.andi %165, %167 : vector<64x64xi1>
    %c48_i32_48 = arith.constant 48 : i32
    %169 = vector.broadcast %c48_i32_48 : i32 to vector<64x64xi32>
    %170 = arith.cmpi sge, %38, %169 : vector<64x64xi32>
    %171 = arith.andi %168, %170 : vector<64x64xi1>
    %c48_i32_49 = arith.constant 48 : i32
    %172 = arith.addi %c48_i32_49, %163 : i32
    %173 = vector.broadcast %172 : i32 to vector<64x64xi32>
    %174 = arith.cmpi slt, %38, %173 : vector<64x64xi32>
    %175 = arith.andi %171, %174 : vector<64x64xi1>
    %176 = arith.andi %175, %42 : vector<64x64xi1>
    %177 = arith.ori %158, %176 : vector<64x64xi1>
    %c5_i32_50 = arith.constant 5 : i32
    %178 = arith.muli %1, %c5_i32_50 : i32
    %c1_i32_51 = arith.constant 1 : i32
    %179 = arith.subi %c1_i32_51, %1 : i32
    %c1_52 = arith.constant 1 : index
    %180 = memref.load %arg2[%c1_52] : memref<2xi32, #tpu.memory_space<smem>>
    %181 = arith.muli %179, %180 : i32
    %182 = arith.addi %178, %181 : i32
    %c56_i32_53 = arith.constant 56 : i32
    %183 = vector.broadcast %c56_i32_53 : i32 to vector<64x64xi32>
    %184 = arith.cmpi sge, %37, %183 : vector<64x64xi32>
    %c64_i32 = arith.constant 64 : i32
    %185 = vector.broadcast %c64_i32 : i32 to vector<64x64xi32>
    %186 = arith.cmpi slt, %37, %185 : vector<64x64xi32>
    %187 = arith.andi %184, %186 : vector<64x64xi1>
    %c56_i32_54 = arith.constant 56 : i32
    %188 = vector.broadcast %c56_i32_54 : i32 to vector<64x64xi32>
    %189 = arith.cmpi sge, %38, %188 : vector<64x64xi32>
    %190 = arith.andi %187, %189 : vector<64x64xi1>
    %c56_i32_55 = arith.constant 56 : i32
    %191 = arith.addi %c56_i32_55, %182 : i32
    %192 = vector.broadcast %191 : i32 to vector<64x64xi32>
    %193 = arith.cmpi slt, %38, %192 : vector<64x64xi32>
    %194 = arith.andi %190, %193 : vector<64x64xi1>
    %195 = arith.andi %194, %42 : vector<64x64xi1>
    %196 = arith.ori %177, %195 : vector<64x64xi1>
    %c0_56 = arith.constant 0 : index
    %c0_57 = arith.constant 0 : index
    %c0_58 = arith.constant 0 : index
    %c0_59 = arith.constant 0 : index
    %197 = vector.load %arg4[%c0_56, %c0_57, %c0_58, %c0_59] : memref<1x2x32x256xf32, #tpu.memory_space<vmem>>, vector<1x1x32x256xf32>
    %198 = vector.shape_cast %197 : vector<1x1x32x256xf32> to vector<32x256xf32>
    %c0_60 = arith.constant 0 : index
    %c0_61 = arith.constant 0 : index
    %c0_62 = arith.constant 0 : index
    %c0_63 = arith.constant 0 : index
    %199 = vector.load %arg5[%c0_60, %c0_61, %c0_62, %c0_63] : memref<1x2x6x96xf32, #tpu.memory_space<vmem>>, vector<1x1x6x96xf32>
    %200 = vector.shape_cast %199 : vector<1x1x6x96xf32> to vector<6x96xf32>
    %201 = vector.extract_strided_slice %198 {offsets = [0, 0], sizes = [32, 96], strides = [1, 1]} : vector<32x256xf32> to vector<32x96xf32>
    %202 = vector.extract_strided_slice %198 {offsets = [0, 96], sizes = [32, 32], strides = [1, 1]} : vector<32x256xf32> to vector<32x32xf32>
    %203 = vector.extract_strided_slice %198 {offsets = [0, 128], sizes = [32, 64], strides = [1, 1]} : vector<32x256xf32> to vector<32x64xf32>
    %204 = vector.extract_strided_slice %198 {offsets = [0, 192], sizes = [32, 64], strides = [1, 1]} : vector<32x256xf32> to vector<32x64xf32>
    %205 = vector.extract_strided_slice %200 {offsets = [0, 0], sizes = [1, 96], strides = [1, 1]} : vector<6x96xf32> to vector<1x96xf32>
    %206 = vector.extract_strided_slice %200 {offsets = [1, 0], sizes = [1, 32], strides = [1, 1]} : vector<6x96xf32> to vector<1x32xf32>
    %207 = vector.extract_strided_slice %200 {offsets = [2, 0], sizes = [1, 64], strides = [1, 1]} : vector<6x96xf32> to vector<1x64xf32>
    %208 = vector.extract_strided_slice %200 {offsets = [3, 0], sizes = [1, 32], strides = [1, 1]} : vector<6x96xf32> to vector<1x32xf32>
    %209 = vector.extract_strided_slice %200 {offsets = [4, 0], sizes = [1, 32], strides = [1, 1]} : vector<6x96xf32> to vector<1x32xf32>
    %210 = vector.extract_strided_slice %200 {offsets = [4, 32], sizes = [1, 32], strides = [1, 1]} : vector<6x96xf32> to vector<1x32xf32>
    %211 = vector.extract_strided_slice %200 {offsets = [5, 0], sizes = [1, 32], strides = [1, 1]} : vector<6x96xf32> to vector<1x32xf32>
    %212 = vector.extract_strided_slice %200 {offsets = [5, 32], sizes = [1, 32], strides = [1, 1]} : vector<6x96xf32> to vector<1x32xf32>
    %cst_64 = arith.constant dense<0.000000e+00> : vector<16xf32>
    %213 = vector.multi_reduction <add>, %36, %cst_64 [1] : vector<16x32xf32> to vector<16xf32>
    %214 = vector.shape_cast %213 : vector<16xf32> to vector<16x1xf32>
    %cst_65 = arith.constant 3.200000e+01 : f32
    %215 = vector.broadcast %cst_65 : f32 to vector<16x1xf32>
    %216 = arith.divf %214, %215 : vector<16x1xf32>
    %217 = vector.broadcast %216 : vector<16x1xf32> to vector<16x32xf32>
    %218 = arith.subf %36, %217 : vector<16x32xf32>
    %219 = arith.mulf %218, %218 : vector<16x32xf32>
    %cst_66 = arith.constant dense<0.000000e+00> : vector<16xf32>
    %220 = vector.multi_reduction <add>, %219, %cst_66 [1] : vector<16x32xf32> to vector<16xf32>
    %221 = vector.shape_cast %220 : vector<16xf32> to vector<16x1xf32>
    %cst_67 = arith.constant 3.200000e+01 : f32
    %222 = vector.broadcast %cst_67 : f32 to vector<16x1xf32>
    %223 = arith.divf %221, %222 : vector<16x1xf32>
    %cst_68 = arith.constant 9.99999974E-6 : f32
    %224 = vector.broadcast %cst_68 : f32 to vector<16x1xf32>
    %225 = arith.addf %223, %224 : vector<16x1xf32>
    %226 = math.rsqrt %225 : vector<16x1xf32>
    %227 = vector.broadcast %226 : vector<16x1xf32> to vector<16x32xf32>
    %228 = arith.mulf %218, %227 : vector<16x32xf32>
    %229 = vector.broadcast %209 : vector<1x32xf32> to vector<16x32xf32>
    %230 = arith.mulf %228, %229 : vector<16x32xf32>
    %231 = vector.broadcast %210 : vector<1x32xf32> to vector<16x32xf32>
    %232 = arith.addf %230, %231 : vector<16x32xf32>
    %cst_69 = arith.constant dense<0.000000e+00> : vector<16x96xf32>
    %233 = tpu.matmul %232, %201, %cst_69 {dimension_numbers = #tpu.dot_dimension_numbers<[1], [0], [0], [1], [0, 0, 1, 1], [], []>} : vector<16x32xf32>, vector<32x96xf32>, vector<16x96xf32> -> vector<16x96xf32>
    %234 = vector.broadcast %205 : vector<1x96xf32> to vector<16x96xf32>
    %235 = arith.addf %233, %234 : vector<16x96xf32>
    %236 = vector.extract_strided_slice %235 {offsets = [0, 0], sizes = [16, 8], strides = [1, 1]} : vector<16x96xf32> to vector<16x8xf32>
    %237 = vector.extract_strided_slice %235 {offsets = [0, 8], sizes = [16, 8], strides = [1, 1]} : vector<16x96xf32> to vector<16x8xf32>
    %238 = vector.extract_strided_slice %235 {offsets = [0, 16], sizes = [16, 8], strides = [1, 1]} : vector<16x96xf32> to vector<16x8xf32>
    %239 = vector.extract_strided_slice %235 {offsets = [0, 24], sizes = [16, 8], strides = [1, 1]} : vector<16x96xf32> to vector<16x8xf32>
    %240 = tpu.concatenate %236, %237, %238, %239 in 0 : vector<16x8xf32>, vector<16x8xf32>, vector<16x8xf32>, vector<16x8xf32> -> vector<64x8xf32>
    %cst_70 = arith.constant 0.353553385 : f32
    %241 = vector.broadcast %cst_70 : f32 to vector<64x8xf32>
    %242 = arith.mulf %240, %241 : vector<64x8xf32>
    %243 = vector.extract_strided_slice %235 {offsets = [0, 32], sizes = [16, 8], strides = [1, 1]} : vector<16x96xf32> to vector<16x8xf32>
    %244 = vector.extract_strided_slice %235 {offsets = [0, 40], sizes = [16, 8], strides = [1, 1]} : vector<16x96xf32> to vector<16x8xf32>
    %245 = vector.extract_strided_slice %235 {offsets = [0, 48], sizes = [16, 8], strides = [1, 1]} : vector<16x96xf32> to vector<16x8xf32>
    %246 = vector.extract_strided_slice %235 {offsets = [0, 56], sizes = [16, 8], strides = [1, 1]} : vector<16x96xf32> to vector<16x8xf32>
    %247 = tpu.concatenate %243, %244, %245, %246 in 0 : vector<16x8xf32>, vector<16x8xf32>, vector<16x8xf32>, vector<16x8xf32> -> vector<64x8xf32>
    %248 = vector.extract_strided_slice %235 {offsets = [0, 64], sizes = [16, 8], strides = [1, 1]} : vector<16x96xf32> to vector<16x8xf32>
    %249 = vector.extract_strided_slice %235 {offsets = [0, 72], sizes = [16, 8], strides = [1, 1]} : vector<16x96xf32> to vector<16x8xf32>
    %250 = vector.extract_strided_slice %235 {offsets = [0, 80], sizes = [16, 8], strides = [1, 1]} : vector<16x96xf32> to vector<16x8xf32>
    %251 = vector.extract_strided_slice %235 {offsets = [0, 88], sizes = [16, 8], strides = [1, 1]} : vector<16x96xf32> to vector<16x8xf32>
    %252 = tpu.concatenate %248, %249, %250, %251 in 0 : vector<16x8xf32>, vector<16x8xf32>, vector<16x8xf32>, vector<16x8xf32> -> vector<64x8xf32>
    %cst_71 = arith.constant dense<0.000000e+00> : vector<64x64xf32>
    %253 = tpu.matmul %242, %247, %cst_71 {dimension_numbers = #tpu.dot_dimension_numbers<[1], [1], [0], [0], [0, 0, 1, 0], [], []>} : vector<64x8xf32>, vector<64x8xf32>, vector<64x64xf32> -> vector<64x64xf32>
    %cst_72 = arith.constant -1.000000e+09 : f32
    %254 = vector.broadcast %cst_72 : f32 to vector<64x64xf32>
    %255 = arith.select %196, %253, %254 : vector<64x64xi1>, vector<64x64xf32>
    %cst_73 = arith.constant dense<0xFF800000> : vector<64xf32>
    %256 = vector.multi_reduction <maximumf>, %255, %cst_73 [1] : vector<64x64xf32> to vector<64xf32>
    %257 = vector.shape_cast %256 : vector<64xf32> to vector<64x1xf32>
    %258 = vector.broadcast %257 : vector<64x1xf32> to vector<64x64xf32>
    %259 = arith.subf %255, %258 : vector<64x64xf32>
    %260 = math.exp %259 : vector<64x64xf32>
    %cst_74 = arith.constant dense<0.000000e+00> : vector<64xf32>
    %261 = vector.multi_reduction <add>, %260, %cst_74 [1] : vector<64x64xf32> to vector<64xf32>
    %262 = vector.shape_cast %261 : vector<64xf32> to vector<64x1xf32>
    %263 = vector.broadcast %262 : vector<64x1xf32> to vector<64x64xf32>
    %264 = arith.divf %260, %263 : vector<64x64xf32>
    %cst_75 = arith.constant dense<0.000000e+00> : vector<64x8xf32>
    %265 = tpu.matmul %264, %252, %cst_75 {dimension_numbers = #tpu.dot_dimension_numbers<[1], [0], [0], [1], [0, 0, 1, 1], [], []>} : vector<64x64xf32>, vector<64x8xf32>, vector<64x8xf32> -> vector<64x8xf32>
    %266 = vector.extract_strided_slice %265 {offsets = [0, 0], sizes = [16, 8], strides = [1, 1]} : vector<64x8xf32> to vector<16x8xf32>
    %267 = vector.extract_strided_slice %265 {offsets = [16, 0], sizes = [16, 8], strides = [1, 1]} : vector<64x8xf32> to vector<16x8xf32>
    %268 = vector.extract_strided_slice %265 {offsets = [32, 0], sizes = [16, 8], strides = [1, 1]} : vector<64x8xf32> to vector<16x8xf32>
    %269 = vector.extract_strided_slice %265 {offsets = [48, 0], sizes = [16, 8], strides = [1, 1]} : vector<64x8xf32> to vector<16x8xf32>
    %270 = tpu.concatenate %266, %267, %268, %269 in 1 : vector<16x8xf32>, vector<16x8xf32>, vector<16x8xf32>, vector<16x8xf32> -> vector<16x32xf32>
    %cst_76 = arith.constant dense<0.000000e+00> : vector<16x32xf32>
    %271 = tpu.matmul %270, %202, %cst_76 {dimension_numbers = #tpu.dot_dimension_numbers<[1], [0], [0], [1], [0, 0, 1, 1], [], []>} : vector<16x32xf32>, vector<32x32xf32>, vector<16x32xf32> -> vector<16x32xf32>
    %272 = arith.addf %36, %271 : vector<16x32xf32>
    %273 = vector.broadcast %206 : vector<1x32xf32> to vector<16x32xf32>
    %274 = arith.addf %272, %273 : vector<16x32xf32>
    %cst_77 = arith.constant dense<0.000000e+00> : vector<16xf32>
    %275 = vector.multi_reduction <add>, %274, %cst_77 [1] : vector<16x32xf32> to vector<16xf32>
    %276 = vector.shape_cast %275 : vector<16xf32> to vector<16x1xf32>
    %cst_78 = arith.constant 3.200000e+01 : f32
    %277 = vector.broadcast %cst_78 : f32 to vector<16x1xf32>
    %278 = arith.divf %276, %277 : vector<16x1xf32>
    %279 = vector.broadcast %278 : vector<16x1xf32> to vector<16x32xf32>
    %280 = arith.subf %274, %279 : vector<16x32xf32>
    %281 = arith.mulf %280, %280 : vector<16x32xf32>
    %cst_79 = arith.constant dense<0.000000e+00> : vector<16xf32>
    %282 = vector.multi_reduction <add>, %281, %cst_79 [1] : vector<16x32xf32> to vector<16xf32>
    %283 = vector.shape_cast %282 : vector<16xf32> to vector<16x1xf32>
    %cst_80 = arith.constant 3.200000e+01 : f32
    %284 = vector.broadcast %cst_80 : f32 to vector<16x1xf32>
    %285 = arith.divf %283, %284 : vector<16x1xf32>
    %cst_81 = arith.constant 9.99999974E-6 : f32
    %286 = vector.broadcast %cst_81 : f32 to vector<16x1xf32>
    %287 = arith.addf %285, %286 : vector<16x1xf32>
    %288 = math.rsqrt %287 : vector<16x1xf32>
    %289 = vector.broadcast %288 : vector<16x1xf32> to vector<16x32xf32>
    %290 = arith.mulf %280, %289 : vector<16x32xf32>
    %291 = vector.broadcast %211 : vector<1x32xf32> to vector<16x32xf32>
    %292 = arith.mulf %290, %291 : vector<16x32xf32>
    %293 = vector.broadcast %212 : vector<1x32xf32> to vector<16x32xf32>
    %294 = arith.addf %292, %293 : vector<16x32xf32>
    %cst_82 = arith.constant dense<0.000000e+00> : vector<16x64xf32>
    %295 = tpu.matmul %294, %203, %cst_82 {dimension_numbers = #tpu.dot_dimension_numbers<[1], [0], [0], [1], [0, 0, 1, 1], [], []>} : vector<16x32xf32>, vector<32x64xf32>, vector<16x64xf32> -> vector<16x64xf32>
    %296 = vector.broadcast %207 : vector<1x64xf32> to vector<16x64xf32>
    %297 = arith.addf %295, %296 : vector<16x64xf32>
    %cst_83 = arith.constant 1.702000e+00 : f32
    %298 = vector.broadcast %cst_83 : f32 to vector<16x64xf32>
    %299 = arith.mulf %298, %297 : vector<16x64xf32>
    %300 = arith.negf %299 : vector<16x64xf32>
    %301 = math.exp %300 : vector<16x64xf32>
    %cst_84 = arith.constant 1.000000e+00 : f32
    %302 = vector.broadcast %cst_84 : f32 to vector<16x64xf32>
    %303 = arith.addf %302, %301 : vector<16x64xf32>
    %304 = arith.divf %302, %303 : vector<16x64xf32>
    %305 = arith.mulf %297, %304 : vector<16x64xf32>
    %cst_85 = arith.constant dense<0.000000e+00> : vector<16x32xf32>
    %306 = tpu.matmul %305, %204, %cst_85 {dimension_numbers = #tpu.dot_dimension_numbers<[1], [1], [0], [0], [0, 0, 1, 0], [], []>} : vector<16x64xf32>, vector<32x64xf32>, vector<16x32xf32> -> vector<16x32xf32>
    %307 = vector.broadcast %208 : vector<1x32xf32> to vector<16x32xf32>
    %308 = arith.addf %306, %307 : vector<16x32xf32>
    %309 = arith.addf %274, %308 : vector<16x32xf32>
    %c0_86 = arith.constant 0 : index
    %c1_87 = arith.constant 1 : index
    %c0_88 = arith.constant 0 : index
    %c0_89 = arith.constant 0 : index
    %310 = vector.load %arg4[%c0_86, %c1_87, %c0_88, %c0_89] : memref<1x2x32x256xf32, #tpu.memory_space<vmem>>, vector<1x1x32x256xf32>
    %311 = vector.shape_cast %310 : vector<1x1x32x256xf32> to vector<32x256xf32>
    %c0_90 = arith.constant 0 : index
    %c1_91 = arith.constant 1 : index
    %c0_92 = arith.constant 0 : index
    %c0_93 = arith.constant 0 : index
    %312 = vector.load %arg5[%c0_90, %c1_91, %c0_92, %c0_93] : memref<1x2x6x96xf32, #tpu.memory_space<vmem>>, vector<1x1x6x96xf32>
    %313 = vector.shape_cast %312 : vector<1x1x6x96xf32> to vector<6x96xf32>
    %314 = vector.extract_strided_slice %311 {offsets = [0, 0], sizes = [32, 96], strides = [1, 1]} : vector<32x256xf32> to vector<32x96xf32>
    %315 = vector.extract_strided_slice %311 {offsets = [0, 96], sizes = [32, 32], strides = [1, 1]} : vector<32x256xf32> to vector<32x32xf32>
    %316 = vector.extract_strided_slice %311 {offsets = [0, 128], sizes = [32, 64], strides = [1, 1]} : vector<32x256xf32> to vector<32x64xf32>
    %317 = vector.extract_strided_slice %311 {offsets = [0, 192], sizes = [32, 64], strides = [1, 1]} : vector<32x256xf32> to vector<32x64xf32>
    %318 = vector.extract_strided_slice %313 {offsets = [0, 0], sizes = [1, 96], strides = [1, 1]} : vector<6x96xf32> to vector<1x96xf32>
    %319 = vector.extract_strided_slice %313 {offsets = [1, 0], sizes = [1, 32], strides = [1, 1]} : vector<6x96xf32> to vector<1x32xf32>
    %320 = vector.extract_strided_slice %313 {offsets = [2, 0], sizes = [1, 64], strides = [1, 1]} : vector<6x96xf32> to vector<1x64xf32>
    %321 = vector.extract_strided_slice %313 {offsets = [3, 0], sizes = [1, 32], strides = [1, 1]} : vector<6x96xf32> to vector<1x32xf32>
    %322 = vector.extract_strided_slice %313 {offsets = [4, 0], sizes = [1, 32], strides = [1, 1]} : vector<6x96xf32> to vector<1x32xf32>
    %323 = vector.extract_strided_slice %313 {offsets = [4, 32], sizes = [1, 32], strides = [1, 1]} : vector<6x96xf32> to vector<1x32xf32>
    %324 = vector.extract_strided_slice %313 {offsets = [5, 0], sizes = [1, 32], strides = [1, 1]} : vector<6x96xf32> to vector<1x32xf32>
    %325 = vector.extract_strided_slice %313 {offsets = [5, 32], sizes = [1, 32], strides = [1, 1]} : vector<6x96xf32> to vector<1x32xf32>
    %cst_94 = arith.constant dense<0.000000e+00> : vector<16xf32>
    %326 = vector.multi_reduction <add>, %309, %cst_94 [1] : vector<16x32xf32> to vector<16xf32>
    %327 = vector.shape_cast %326 : vector<16xf32> to vector<16x1xf32>
    %cst_95 = arith.constant 3.200000e+01 : f32
    %328 = vector.broadcast %cst_95 : f32 to vector<16x1xf32>
    %329 = arith.divf %327, %328 : vector<16x1xf32>
    %330 = vector.broadcast %329 : vector<16x1xf32> to vector<16x32xf32>
    %331 = arith.subf %309, %330 : vector<16x32xf32>
    %332 = arith.mulf %331, %331 : vector<16x32xf32>
    %cst_96 = arith.constant dense<0.000000e+00> : vector<16xf32>
    %333 = vector.multi_reduction <add>, %332, %cst_96 [1] : vector<16x32xf32> to vector<16xf32>
    %334 = vector.shape_cast %333 : vector<16xf32> to vector<16x1xf32>
    %cst_97 = arith.constant 3.200000e+01 : f32
    %335 = vector.broadcast %cst_97 : f32 to vector<16x1xf32>
    %336 = arith.divf %334, %335 : vector<16x1xf32>
    %cst_98 = arith.constant 9.99999974E-6 : f32
    %337 = vector.broadcast %cst_98 : f32 to vector<16x1xf32>
    %338 = arith.addf %336, %337 : vector<16x1xf32>
    %339 = math.rsqrt %338 : vector<16x1xf32>
    %340 = vector.broadcast %339 : vector<16x1xf32> to vector<16x32xf32>
    %341 = arith.mulf %331, %340 : vector<16x32xf32>
    %342 = vector.broadcast %322 : vector<1x32xf32> to vector<16x32xf32>
    %343 = arith.mulf %341, %342 : vector<16x32xf32>
    %344 = vector.broadcast %323 : vector<1x32xf32> to vector<16x32xf32>
    %345 = arith.addf %343, %344 : vector<16x32xf32>
    %cst_99 = arith.constant dense<0.000000e+00> : vector<16x96xf32>
    %346 = tpu.matmul %345, %314, %cst_99 {dimension_numbers = #tpu.dot_dimension_numbers<[1], [0], [0], [1], [0, 0, 1, 1], [], []>} : vector<16x32xf32>, vector<32x96xf32>, vector<16x96xf32> -> vector<16x96xf32>
    %347 = vector.broadcast %318 : vector<1x96xf32> to vector<16x96xf32>
    %348 = arith.addf %346, %347 : vector<16x96xf32>
    %349 = vector.extract_strided_slice %348 {offsets = [0, 0], sizes = [16, 8], strides = [1, 1]} : vector<16x96xf32> to vector<16x8xf32>
    %350 = vector.extract_strided_slice %348 {offsets = [0, 8], sizes = [16, 8], strides = [1, 1]} : vector<16x96xf32> to vector<16x8xf32>
    %351 = vector.extract_strided_slice %348 {offsets = [0, 16], sizes = [16, 8], strides = [1, 1]} : vector<16x96xf32> to vector<16x8xf32>
    %352 = vector.extract_strided_slice %348 {offsets = [0, 24], sizes = [16, 8], strides = [1, 1]} : vector<16x96xf32> to vector<16x8xf32>
    %353 = tpu.concatenate %349, %350, %351, %352 in 0 : vector<16x8xf32>, vector<16x8xf32>, vector<16x8xf32>, vector<16x8xf32> -> vector<64x8xf32>
    %cst_100 = arith.constant 0.353553385 : f32
    %354 = vector.broadcast %cst_100 : f32 to vector<64x8xf32>
    %355 = arith.mulf %353, %354 : vector<64x8xf32>
    %356 = vector.extract_strided_slice %348 {offsets = [0, 32], sizes = [16, 8], strides = [1, 1]} : vector<16x96xf32> to vector<16x8xf32>
    %357 = vector.extract_strided_slice %348 {offsets = [0, 40], sizes = [16, 8], strides = [1, 1]} : vector<16x96xf32> to vector<16x8xf32>
    %358 = vector.extract_strided_slice %348 {offsets = [0, 48], sizes = [16, 8], strides = [1, 1]} : vector<16x96xf32> to vector<16x8xf32>
    %359 = vector.extract_strided_slice %348 {offsets = [0, 56], sizes = [16, 8], strides = [1, 1]} : vector<16x96xf32> to vector<16x8xf32>
    %360 = tpu.concatenate %356, %357, %358, %359 in 0 : vector<16x8xf32>, vector<16x8xf32>, vector<16x8xf32>, vector<16x8xf32> -> vector<64x8xf32>
    %361 = vector.extract_strided_slice %348 {offsets = [0, 64], sizes = [16, 8], strides = [1, 1]} : vector<16x96xf32> to vector<16x8xf32>
    %362 = vector.extract_strided_slice %348 {offsets = [0, 72], sizes = [16, 8], strides = [1, 1]} : vector<16x96xf32> to vector<16x8xf32>
    %363 = vector.extract_strided_slice %348 {offsets = [0, 80], sizes = [16, 8], strides = [1, 1]} : vector<16x96xf32> to vector<16x8xf32>
    %364 = vector.extract_strided_slice %348 {offsets = [0, 88], sizes = [16, 8], strides = [1, 1]} : vector<16x96xf32> to vector<16x8xf32>
    %365 = tpu.concatenate %361, %362, %363, %364 in 0 : vector<16x8xf32>, vector<16x8xf32>, vector<16x8xf32>, vector<16x8xf32> -> vector<64x8xf32>
    %cst_101 = arith.constant dense<0.000000e+00> : vector<64x64xf32>
    %366 = tpu.matmul %355, %360, %cst_101 {dimension_numbers = #tpu.dot_dimension_numbers<[1], [1], [0], [0], [0, 0, 1, 0], [], []>} : vector<64x8xf32>, vector<64x8xf32>, vector<64x64xf32> -> vector<64x64xf32>
    %cst_102 = arith.constant -1.000000e+09 : f32
    %367 = vector.broadcast %cst_102 : f32 to vector<64x64xf32>
    %368 = arith.select %196, %366, %367 : vector<64x64xi1>, vector<64x64xf32>
    %cst_103 = arith.constant dense<0xFF800000> : vector<64xf32>
    %369 = vector.multi_reduction <maximumf>, %368, %cst_103 [1] : vector<64x64xf32> to vector<64xf32>
    %370 = vector.shape_cast %369 : vector<64xf32> to vector<64x1xf32>
    %371 = vector.broadcast %370 : vector<64x1xf32> to vector<64x64xf32>
    %372 = arith.subf %368, %371 : vector<64x64xf32>
    %373 = math.exp %372 : vector<64x64xf32>
    %cst_104 = arith.constant dense<0.000000e+00> : vector<64xf32>
    %374 = vector.multi_reduction <add>, %373, %cst_104 [1] : vector<64x64xf32> to vector<64xf32>
    %375 = vector.shape_cast %374 : vector<64xf32> to vector<64x1xf32>
    %376 = vector.broadcast %375 : vector<64x1xf32> to vector<64x64xf32>
    %377 = arith.divf %373, %376 : vector<64x64xf32>
    %cst_105 = arith.constant dense<0.000000e+00> : vector<64x8xf32>
    %378 = tpu.matmul %377, %365, %cst_105 {dimension_numbers = #tpu.dot_dimension_numbers<[1], [0], [0], [1], [0, 0, 1, 1], [], []>} : vector<64x64xf32>, vector<64x8xf32>, vector<64x8xf32> -> vector<64x8xf32>
    %379 = vector.extract_strided_slice %378 {offsets = [0, 0], sizes = [16, 8], strides = [1, 1]} : vector<64x8xf32> to vector<16x8xf32>
    %380 = vector.extract_strided_slice %378 {offsets = [16, 0], sizes = [16, 8], strides = [1, 1]} : vector<64x8xf32> to vector<16x8xf32>
    %381 = vector.extract_strided_slice %378 {offsets = [32, 0], sizes = [16, 8], strides = [1, 1]} : vector<64x8xf32> to vector<16x8xf32>
    %382 = vector.extract_strided_slice %378 {offsets = [48, 0], sizes = [16, 8], strides = [1, 1]} : vector<64x8xf32> to vector<16x8xf32>
    %383 = tpu.concatenate %379, %380, %381, %382 in 1 : vector<16x8xf32>, vector<16x8xf32>, vector<16x8xf32>, vector<16x8xf32> -> vector<16x32xf32>
    %cst_106 = arith.constant dense<0.000000e+00> : vector<16x32xf32>
    %384 = tpu.matmul %383, %315, %cst_106 {dimension_numbers = #tpu.dot_dimension_numbers<[1], [0], [0], [1], [0, 0, 1, 1], [], []>} : vector<16x32xf32>, vector<32x32xf32>, vector<16x32xf32> -> vector<16x32xf32>
    %385 = arith.addf %309, %384 : vector<16x32xf32>
    %386 = vector.broadcast %319 : vector<1x32xf32> to vector<16x32xf32>
    %387 = arith.addf %385, %386 : vector<16x32xf32>
    %cst_107 = arith.constant dense<0.000000e+00> : vector<16xf32>
    %388 = vector.multi_reduction <add>, %387, %cst_107 [1] : vector<16x32xf32> to vector<16xf32>
    %389 = vector.shape_cast %388 : vector<16xf32> to vector<16x1xf32>
    %cst_108 = arith.constant 3.200000e+01 : f32
    %390 = vector.broadcast %cst_108 : f32 to vector<16x1xf32>
    %391 = arith.divf %389, %390 : vector<16x1xf32>
    %392 = vector.broadcast %391 : vector<16x1xf32> to vector<16x32xf32>
    %393 = arith.subf %387, %392 : vector<16x32xf32>
    %394 = arith.mulf %393, %393 : vector<16x32xf32>
    %cst_109 = arith.constant dense<0.000000e+00> : vector<16xf32>
    %395 = vector.multi_reduction <add>, %394, %cst_109 [1] : vector<16x32xf32> to vector<16xf32>
    %396 = vector.shape_cast %395 : vector<16xf32> to vector<16x1xf32>
    %cst_110 = arith.constant 3.200000e+01 : f32
    %397 = vector.broadcast %cst_110 : f32 to vector<16x1xf32>
    %398 = arith.divf %396, %397 : vector<16x1xf32>
    %cst_111 = arith.constant 9.99999974E-6 : f32
    %399 = vector.broadcast %cst_111 : f32 to vector<16x1xf32>
    %400 = arith.addf %398, %399 : vector<16x1xf32>
    %401 = math.rsqrt %400 : vector<16x1xf32>
    %402 = vector.broadcast %401 : vector<16x1xf32> to vector<16x32xf32>
    %403 = arith.mulf %393, %402 : vector<16x32xf32>
    %404 = vector.broadcast %324 : vector<1x32xf32> to vector<16x32xf32>
    %405 = arith.mulf %403, %404 : vector<16x32xf32>
    %406 = vector.broadcast %325 : vector<1x32xf32> to vector<16x32xf32>
    %407 = arith.addf %405, %406 : vector<16x32xf32>
    %cst_112 = arith.constant dense<0.000000e+00> : vector<16x64xf32>
    %408 = tpu.matmul %407, %316, %cst_112 {dimension_numbers = #tpu.dot_dimension_numbers<[1], [0], [0], [1], [0, 0, 1, 1], [], []>} : vector<16x32xf32>, vector<32x64xf32>, vector<16x64xf32> -> vector<16x64xf32>
    %409 = vector.broadcast %320 : vector<1x64xf32> to vector<16x64xf32>
    %410 = arith.addf %408, %409 : vector<16x64xf32>
    %cst_113 = arith.constant 1.702000e+00 : f32
    %411 = vector.broadcast %cst_113 : f32 to vector<16x64xf32>
    %412 = arith.mulf %411, %410 : vector<16x64xf32>
    %413 = arith.negf %412 : vector<16x64xf32>
    %414 = math.exp %413 : vector<16x64xf32>
    %cst_114 = arith.constant 1.000000e+00 : f32
    %415 = vector.broadcast %cst_114 : f32 to vector<16x64xf32>
    %416 = arith.addf %415, %414 : vector<16x64xf32>
    %417 = arith.divf %415, %416 : vector<16x64xf32>
    %418 = arith.mulf %410, %417 : vector<16x64xf32>
    %cst_115 = arith.constant dense<0.000000e+00> : vector<16x32xf32>
    %419 = tpu.matmul %418, %317, %cst_115 {dimension_numbers = #tpu.dot_dimension_numbers<[1], [1], [0], [0], [0, 0, 1, 0], [], []>} : vector<16x64xf32>, vector<32x64xf32>, vector<16x32xf32> -> vector<16x32xf32>
    %420 = vector.broadcast %321 : vector<1x32xf32> to vector<16x32xf32>
    %421 = arith.addf %419, %420 : vector<16x32xf32>
    %422 = arith.addf %387, %421 : vector<16x32xf32>
    %423 = tpu.iota {dimensions = array<i32: 0>} : vector<16x1xi32>
    %c1_i32_116 = arith.constant 1 : i32
    %424 = arith.subi %c1_i32_116, %1 : i32
    %c0_117 = arith.constant 0 : index
    %425 = memref.load %arg1[%c0_117] : memref<2xi32, #tpu.memory_space<smem>>
    %426 = arith.muli %424, %425 : i32
    %c0_i32_118 = arith.constant 0 : i32
    %427 = arith.addi %c0_i32_118, %426 : i32
    %428 = vector.broadcast %427 : i32 to vector<16x1xi32>
    %429 = arith.cmpi eq, %423, %428 : vector<16x1xi32>
    %430 = arith.extui %429 : vector<16x1xi1> to vector<16x1xi32>
    %431 = arith.sitofp %430 : vector<16x1xi32> to vector<16x1xf32>
    %432 = vector.broadcast %431 : vector<16x1xf32> to vector<16x32xf32>
    %433 = arith.mulf %432, %422 : vector<16x32xf32>
    %cst_119 = arith.constant dense<0.000000e+00> : vector<32xf32>
    %434 = vector.multi_reduction <add>, %433, %cst_119 [0] : vector<16x32xf32> to vector<32xf32>
    %435 = vector.shape_cast %434 : vector<32xf32> to vector<1x32xf32>
    %c1_i32_120 = arith.constant 1 : i32
    %436 = arith.subi %c1_i32_120, %1 : i32
    %c1_121 = arith.constant 1 : index
    %437 = memref.load %arg1[%c1_121] : memref<2xi32, #tpu.memory_space<smem>>
    %438 = arith.muli %436, %437 : i32
    %c8_i32_122 = arith.constant 8 : i32
    %439 = arith.addi %c8_i32_122, %438 : i32
    %440 = vector.broadcast %439 : i32 to vector<16x1xi32>
    %441 = arith.cmpi eq, %423, %440 : vector<16x1xi32>
    %442 = arith.extui %441 : vector<16x1xi1> to vector<16x1xi32>
    %443 = arith.sitofp %442 : vector<16x1xi32> to vector<16x1xf32>
    %444 = vector.broadcast %443 : vector<16x1xf32> to vector<16x32xf32>
    %445 = arith.mulf %444, %422 : vector<16x32xf32>
    %cst_123 = arith.constant dense<0.000000e+00> : vector<32xf32>
    %446 = vector.multi_reduction <add>, %445, %cst_123 [0] : vector<16x32xf32> to vector<32xf32>
    %447 = vector.shape_cast %446 : vector<32xf32> to vector<1x32xf32>
    %448 = tpu.concatenate %435, %447 in 0 : vector<1x32xf32>, vector<1x32xf32> -> vector<2x32xf32>
    %cst_124 = arith.constant dense<0.000000e+00> : vector<2xf32>
    %449 = vector.multi_reduction <add>, %448, %cst_124 [1] : vector<2x32xf32> to vector<2xf32>
    %450 = vector.shape_cast %449 : vector<2xf32> to vector<2x1xf32>
    %cst_125 = arith.constant 3.200000e+01 : f32
    %451 = vector.broadcast %cst_125 : f32 to vector<2x1xf32>
    %452 = arith.divf %450, %451 : vector<2x1xf32>
    %453 = vector.broadcast %452 : vector<2x1xf32> to vector<2x32xf32>
    %454 = arith.subf %448, %453 : vector<2x32xf32>
    %455 = arith.mulf %454, %454 : vector<2x32xf32>
    %cst_126 = arith.constant dense<0.000000e+00> : vector<2xf32>
    %456 = vector.multi_reduction <add>, %455, %cst_126 [1] : vector<2x32xf32> to vector<2xf32>
    %457 = vector.shape_cast %456 : vector<2xf32> to vector<2x1xf32>
    %cst_127 = arith.constant 3.200000e+01 : f32
    %458 = vector.broadcast %cst_127 : f32 to vector<2x1xf32>
    %459 = arith.divf %457, %458 : vector<2x1xf32>
    %cst_128 = arith.constant 9.99999974E-6 : f32
    %460 = vector.broadcast %cst_128 : f32 to vector<2x1xf32>
    %461 = arith.addf %459, %460 : vector<2x1xf32>
    %462 = math.rsqrt %461 : vector<2x1xf32>
    %463 = vector.broadcast %462 : vector<2x1xf32> to vector<2x32xf32>
    %464 = arith.mulf %454, %463 : vector<2x32xf32>
    %465 = vector.broadcast %9 : vector<1x32xf32> to vector<2x32xf32>
    %466 = arith.mulf %464, %465 : vector<2x32xf32>
    %467 = vector.broadcast %10 : vector<1x32xf32> to vector<2x32xf32>
    %468 = arith.addf %466, %467 : vector<2x32xf32>
    %cst_129 = arith.constant dense<0.000000e+00> : vector<2x32xf32>
    %469 = tpu.matmul %468, %5, %cst_129 {dimension_numbers = #tpu.dot_dimension_numbers<[1], [0], [0], [1], [0, 0, 1, 1], [], []>} : vector<2x32xf32>, vector<32x32xf32>, vector<2x32xf32> -> vector<2x32xf32>
    %470 = vector.broadcast %6 : vector<1x32xf32> to vector<2x32xf32>
    %471 = arith.addf %469, %470 : vector<2x32xf32>
    %472 = arith.mulf %471, %471 : vector<2x32xf32>
    %cst_130 = arith.constant dense<0.000000e+00> : vector<2xf32>
    %473 = vector.multi_reduction <add>, %472, %cst_130 [1] : vector<2x32xf32> to vector<2xf32>
    %474 = vector.shape_cast %473 : vector<2xf32> to vector<2x1xf32>
    %475 = math.rsqrt %474 : vector<2x1xf32>
    %476 = vector.broadcast %475 : vector<2x1xf32> to vector<2x32xf32>
    %477 = arith.mulf %471, %476 : vector<2x32xf32>
    %478 = vector.extract_strided_slice %477 {offsets = [0, 0], sizes = [2, 16], strides = [1, 1]} : vector<2x32xf32> to vector<2x16xf32>
    %c0_131 = arith.constant 0 : index
    %c0_132 = arith.constant 0 : index
    %c0_133 = arith.constant 0 : index
    %479 = vector.load %arg7[%c0_131, %c0_132, %c0_133] : memref<1x2x16xf32, #tpu.memory_space<vmem>>, vector<1x2x16xf32>
    %480 = vector.shape_cast %479 : vector<1x2x16xf32> to vector<2x16xf32>
    %481 = vector.shape_cast %478 : vector<2x16xf32> to vector<1x2x16xf32>
    tpu.vector_store %arg7[%c0_131, %c0_132, %c0_133], %481 {strides = array<i32>} : memref<1x2x16xf32, #tpu.memory_space<vmem>>, vector<1x2x16xf32>,
    return
  }
  func.func @transform_0(%arg0: i32, %arg1: memref<2xi32, #tpu.memory_space<smem>>, %arg2: memref<2xi32, #tpu.memory_space<smem>>) -> (i32, i32, i32) {
    %c0_i32 = arith.constant 0 : i32
    %c0_i32_0 = arith.constant 0 : i32
    %c0_i32_1 = arith.constant 0 : i32
    return %arg0, %c0_i32, %c0_i32_0 : i32, i32, i32
  }
  func.func @transform_1(%arg0: i32, %arg1: memref<2xi32, #tpu.memory_space<smem>>, %arg2: memref<2xi32, #tpu.memory_space<smem>>) -> (i32, i32, i32, i32) {
    %c0_i32 = arith.constant 0 : i32
    %c0_i32_0 = arith.constant 0 : i32
    %c0_i32_1 = arith.constant 0 : i32
    %c0_i32_2 = arith.constant 0 : i32
    return %arg0, %c0_i32, %c0_i32_0, %c0_i32_1 : i32, i32, i32, i32
  }
  func.func @transform_2(%arg0: i32, %arg1: memref<2xi32, #tpu.memory_space<smem>>, %arg2: memref<2xi32, #tpu.memory_space<smem>>) -> (i32, i32, i32, i32) {
    %c0_i32 = arith.constant 0 : i32
    %c0_i32_0 = arith.constant 0 : i32
    %c0_i32_1 = arith.constant 0 : i32
    %c0_i32_2 = arith.constant 0 : i32
    return %arg0, %c0_i32, %c0_i32_0, %c0_i32_1 : i32, i32, i32, i32
  }
  func.func @transform_3(%arg0: i32, %arg1: memref<2xi32, #tpu.memory_space<smem>>, %arg2: memref<2xi32, #tpu.memory_space<smem>>) -> (i32, i32, i32) {
    %c0_i32 = arith.constant 0 : i32
    %c0_i32_0 = arith.constant 0 : i32
    %c0_i32_1 = arith.constant 0 : i32
    return %arg0, %c0_i32, %c0_i32_0 : i32, i32, i32
  }
  func.func @transform_4(%arg0: i32, %arg1: memref<2xi32, #tpu.memory_space<smem>>, %arg2: memref<2xi32, #tpu.memory_space<smem>>) -> (i32, i32, i32) {
    %c0_i32 = arith.constant 0 : i32
    %c0_i32_0 = arith.constant 0 : i32
    %c0_i32_1 = arith.constant 0 : i32
    return %arg0, %c0_i32, %c0_i32_0 : i32, i32, i32
  }
}

</mosaic_0001>

<bundles_post_ra>
// kernel: clip_forward.1
= control target key start
LH: loop header
LB: loop body
LE: loop exit
PB: predicated region body
PF: predicated region fallthrough
CT: control target
= control target key end

     0   :  { %s4605_s0 = inlined_call_operand.vmem [shape: s32[2], index: 0, kind: input, shape index: {}]   ;;  %s4606_s2 = inlined_call_operand.vmem [shape: f32[2,16,32], index: 2, kind: input, shape index: {}]   ;;  %s4607_s3 = inlined_call_operand.vmem [shape: f32[2,2,32,256], index: 3, kind: input, shape index: {}]   ;;  %s4608_s4 = inlined_call_operand.vmem [shape: f32[2,2,6,96], index: 4, kind: input, shape index: {}]   ;;  %s4609_s5 = inlined_call_operand.vmem [shape: f32[2,37,32], index: 5, kind: input, shape index: {}]   ;;  %s4610_s6 = inlined_call_operand.vmem [shape: f32[2,2,16], index: 6, kind: output, shape index: {}]   ;;  %s4611_s1 = inlined_call_operand.vmem [shape: s32[2], index: 1, kind: input, shape index: {}]  }
   0x1   :  { %s11_s23 = sshll.u32 %s4605_s0, 4  ;;  %s15_s26 = sshll.u32 %s4611_s1, 4  ;;  %s12_s23 = int_to_ptr.vmem [resolvable:$true] %s11_s23  ;;  %s16_s26 = int_to_ptr.vmem [resolvable:$true] %s15_s26 }
   0x2   :  { %s3843_s27 = scalar_lea.vmem %s12_s23, 16  ;;  %p3848_p1 = scmp.lt.s32.totalorder %s12_s23, %s12_s23 }
   0x3   :  { %p3844_p0 = scmp.ne.s32.totalorder %s12_s23, %s3843_s27  ;;  %p3849_p2 = scmp.lt.s32.totalorder %s3843_s27, %s3843_s27 }
   0x5   :  { %p3850_p3 = por %p3849_p2, %p3848_p1 }
   0x7   :  { %p3851_p4 = pnand %p3850_p3, %p3844_p0 }
   0x9   :  { %3854 = shalt.err (!%p3851_p4)  }
   0xa   :  { %s3877_s28 = smov [#allocation3]   ;;  %s3855_s29 = scalar_lea.vmem %s16_s26, 16 }
   0xb   :  { %14 = dma.vmem_to_smem %s12_s23, 16, %s3877_s28, [#allocation2] }
   0xc   :  { %p3856_p5 = scmp.ne.s32.totalorder %s16_s26, %s3855_s29  ;;  %p3860_p6 = scmp.lt.s32.totalorder %s16_s26, %s16_s26 }
   0xd   :  { %p3861_p7 = scmp.lt.s32.totalorder %s3855_s29, %s3855_s29 }
   0xf   :  { %p3862_p8 = por %p3861_p7, %p3860_p6 }
  0x11   :  { %p3863_p9 = pnand %p3862_p8, %p3856_p5 }
  0x13   :  { %3866 = shalt.err (!%p3863_p9)  }
  0x14   :  { %s3878_s0 = smov [#allocation4]  }
  0x15   :  { %18 = dma.vmem_to_smem %s16_s26, 16, %s3878_s0, [#allocation2] }
  0x16   :  { %3871 = dma.done.wait [#allocation2], 32 }
  0x17   :  { %3872 = vsyncadd [#allocation2], 4294967264 }
  0x18   :  { %20 = sfence }
  0x19   :  { %s3932_s1 = smov 0  }
  0x1a LB: > { %s3938_s30 = sadd.s32 4294967295, %s3875_s1   ;;  %p3002_p10 = scmp.ge.s32.totalorder %s3875_s1, 1  ;;  %s3875_s1 = sphi %s3932_s1, %s26_s1  }
  0x1b   : > { %p204_p11 = scmp.lt.s32.totalorder %s3875_s1, 3 }
  0x1d   : > { %p205_p12 = pnand %p3002_p10, %p204_p11 }
  0x1e   : > { %p244_p13 = scmp.lt.s32.totalorder (!%p205_p12), %s3938_s30, 1  ;;  %vm4612_vm0 = vcmask (!%p205_p12), 261120   ;;  %v306_v16 = vlaneseq (!%p205_p12)  ;;  %p268_p0 = scmp.eq.s32.totalorder (!%p205_p12), %s3938_s30, 1  ;;  %vm4613_vm1 = vcmask (!%p205_p12), 64512   ;;  %vm4614_vm13 = vcmask (!%p205_p12), 523264  }
  0x1f   : > { %208 = sbr.rel (%p205_p12) target bundleno = 6443 (0x192b), region = 36  ;;  %s3879_s25 = smov (!%p205_p12), 96   ;;  %vm4062_vm2 = vmpackc.low (!%p205_p12), %vm4613_vm1, %vm4613_vm1 }
  0x20   : > { %v3958_v20 = vshrl.u32 (!%p205_p12), %v306_v16, 7  ;;  %s3880_s26 = smov (!%p205_p12), 112   ;;  %s3881_s27 = smov (!%p205_p12), 120  }
  0x21   : > { %s3882_s28 = smov (!%p205_p12), 104   ;;  %s3012_s29 = sld [smem:[#allocation4 + $0x1]] (!%p205_p12) }
  0x22   : > { %v3967_v22 = vsub.s32 (!%p205_p12), 1, %v3958_v20  ;;  %v3971_v24 = vsub.s32 (!%p205_p12), 2, %v3958_v20  ;;  %v3998_v54 = vsub.s32 (!%p205_p12), 4, %v3958_v20  ;;  %s3883_s23 = smov (!%p205_p12), 64  }
  0x26   : > { %s3944_s7 = scalar_select %p244_p13, %s3938_s30, 1 }
  0x27   : > { %s3973_s16 = scalar_select %p268_p0, 1, 0 }
  0x28   : > { %s3106_s8 = sshll.u32 %s3944_s7, 4  ;;  %s3595_s12 = smul.u32 40, %s3944_s7 }
  0x29   : > { %s248_s11 = scalar_lea.vmem %s4606_s2, %s3106_s8  ;;  %s270_s17 = scvt.s32.f32 %s3973_s16 }
  0x2a   : > { %v276_v0 = vld [vmem:[%s248_s11] sm:$0xff]  ;;  %v277_v1 = vld [vmem:[%s248_s11 + $0x8] sm:$0xff]  ;;  %s3963_s15 = scalar_lea.vmem %s4609_s5, %s3595_s12  ;;  %s3995_s20 = scalar_lea.vmem %s4608_s4, %s3106_s8 }
  0x2b   : > { %v279_v2 = vsel %vm4612_vm0, %v276_v0, 0.0  ;;  %v282_v3 = vsel %vm4612_vm0, %v277_v1, 0.0  ;;  %v275_v23 = vld [vmem:[%s3963_s15 + $0x20] sm:$0x1f]  ;;  %v320_v33 = vstv %s270_s17  ;;  %s3107_s21 = sshll.u32 %s3944_s7, 7  ;;  %s4090_s0 = ssub.s32 1, %s3973_s16 }
  0x2c   : > { %280 = vadd.xlane.f32.xlu0 %v279_v2  ;;  %v309_v25 = vrot.slane %v275_v23, %v3967_v22  ;;  %v315_v28 = vrot.slane %v275_v23, %v3971_v24  ;;  %v4001_v55 = vld [vmem:[%s3995_s20] sm:$0x3f]  ;;  %s4009_s24 = scalar_lea.vmem %s4607_s3, %s3107_s21  ;;  %s362_s30 = smul.u32 5, %s3973_s16 }
  0x2d   : > { %v887_v56 = vrot.slane %v4001_v55, %v3998_v54  ;;  %v4013_v57 = vld [vmem:[%s4009_s24] sm:$0xff]  ;;  %v4016_v58 = vld [vmem:[%s4009_s24 + $0x10] sm:$0xff]  ;;  %s364_s8 = sld [smem:[#allocation4]]  ;;  %s427_s9 = smul.u32 %s3012_s29, %s4090_s0 }
  0x2e   : > { %v3658_v59 = vpack.i.bf16 %v4016_v58, %v4013_v57  ;;  %v3437_v60 = vpack.c.bf16 %v4016_v58, %v4013_v57  ;;  %v4023_v61 = vld [vmem:[%s4009_s24 + $0x20] sm:$0xff]  ;;  %v4026_v62 = vld [vmem:[%s4009_s24 + $0x30] sm:$0xff]  ;;  %s3011_s11 = sshll.u32 %s3973_s16, 3  ;;  %s3884_s29 = smov 32  }
  0x2f   : > { %v3441_v63 = vpack.c.bf16 %v4026_v62, %v4023_v61  ;;  %s4094_s10 = sadd.s32 %s427_s9, %s362_s30  ;;  %s3887_s9 = smov 24  }
  0x30   : > { %283 = vadd.xlane.f32.xlu0 %v282_v3  ;;  %3438 = vmatprep.subr.bf16.mxu0 %v3437_v60  ;;  %s462_s12 = sadd.s32 8, %s4094_s10  ;;  %s582_s17 = sadd.s32 24, %s4094_s10 }
  0x31   : > { %3440 = vmatpush3.bf16.msra.mxu0 %v3437_v60  ;;  %s702_s19 = sadd.s32 40, %s4094_s10  ;;  %s822_s22 = sadd.s32 56, %s4094_s10 }
  0x32   : > { %3442 = vmatprep.subr.bf16.mxu0 %v3441_v63 }
  0x33   : > { %s365_s13 = smul.u32 %s364_s8, %s4090_s0  ;;  %s3886_s8 = smov 16  }
  0x35   : > { %3444 = vmatpush3.bf16.msra.mxu0 %v3441_v63  ;;  %s4107_s14 = sadd.s32 %s365_s13, %s362_s30  ;;  %s3885_s30 = smov 8  }
  0x36   : > { %s522_s16 = sadd.s32 16, %s4107_s14  ;;  %s642_s18 = sadd.s32 32, %s4107_s14 }
  0x37   : > { %s762_s21 = sadd.s32 48, %s4107_s14 }
  0xb9   : > { %v281_v4 = vpop.xlane.xlu0 %280 }
  0xba   : > { %v286_v5 = vmul.f32 0.03125, %v281_v4 }
  0xbc   : > { %v288_v6 = vsub.f32 %v276_v0, %v286_v5 }
  0xbd   : > { %v284_v7 = vpop.xlane.xlu0 %283 }
  0xbe   : > { %v287_v8 = vmul.f32 0.03125, %v284_v7  ;;  %v290_v9 = vmul.f32 %v288_v6, %v288_v6 }
  0xc0   : > { %v289_v10 = vsub.f32 %v277_v1, %v287_v8  ;;  %v292_v11 = vsel %vm4612_vm0, %v290_v9, 0.0 }
  0xc1   : > { %293 = vadd.xlane.f32.xlu1 %v292_v11 }
  0xc2   : > { %v291_v12 = vmul.f32 %v289_v10, %v289_v10 }
  0xc4   : > { %v295_v13 = vsel %vm4612_vm0, %v291_v12, 0.0 }
  0xc5   : > { %296 = vadd.xlane.f32.xlu1 %v295_v13 }
 0x14e   : > { %v294_v14 = vpop.xlane.xlu1 %293 }
 0x14f   : > { %v298_v15 = vmul.f32 0.03125, %v294_v14 }
 0x151   : > { %v300_v17 = vadd.f32 1e-05, %v298_v15  ;;  %v4033_v15 = vsub.s32 0, %v3958_v20 }
 0x152   : > { %v297_v18 = vpop.xlane.xlu1 %296 }
 0x153   : > { %3738 = vrsqrt.f32 %v300_v17  ;;  %v299_v19 = vmul.f32 0.03125, %v297_v18  ;;  %v899_v17 = vrot.slane %v4001_v55, %v4033_v15 }
 0x155   : > { %v301_v21 = vadd.f32 1e-05, %v299_v19 }
 0x157   : > { %3740 = vrsqrt.f32 %v301_v21 }
 0x15d   : > { %v3739_v26 = vpop.eup %3738 }
 0x15e   : > { %v304_v27 = vmul.f32 %v3739_v26, %v288_v6 }
 0x160   : > { %v310_v29 = vmul.f32 %v309_v25, %v304_v27 }
 0x161   : > { %v3741_v30 = vpop.eup %3740 }
 0x162   : > { %v305_v31 = vmul.f32 %v3741_v30, %v289_v10  ;;  %v316_v32 = vadd.f32 %v315_v28, %v310_v29 }
 0x164   : > { %v318_v34 = vsub.f32 %v316_v32, %v276_v0  ;;  %v311_v35 = vmul.f32 %v309_v25, %v305_v31 }
 0x166   : > { %v321_v36 = vmul.f32 %v320_v33, %v318_v34  ;;  %v317_v37 = vadd.f32 %v315_v28, %v311_v35 }
 0x168   : > { %v3978_v38 = vadd.f32 %v321_v36, %v276_v0  ;;  %v319_v39 = vsub.f32 %v317_v37, %v277_v1 }
 0x16a   : > { %v858_v40 = vsel %vm4612_vm0, %v3978_v38, 0.0  ;;  %v322_v41 = vmul.f32 %v320_v33, %v319_v39 }
 0x16b   : > { %859 = vadd.xlane.f32.xlu0 %v858_v40 }
 0x16c   : > { %v3982_v42 = vadd.f32 %v322_v41, %v277_v1 }
 0x16e   : > { %v861_v43 = vsel %vm4612_vm0, %v3982_v42, 0.0 }
 0x16f   : > { %862 = vadd.xlane.f32.xlu1 %v861_v43 }
 0x1f8   : > { %v860_v44 = vpop.xlane.xlu0 %859 }
 0x1f9   : > { %v864_v45 = vmul.f32 0.03125, %v860_v44 }
 0x1fb   : > { %v866_v46 = vsub.f32 %v3978_v38, %v864_v45 }
 0x1fc   : > { %v863_v47 = vpop.xlane.xlu1 %862 }
 0x1fd   : > { %v865_v48 = vmul.f32 0.03125, %v863_v47  ;;  %v868_v49 = vmul.f32 %v866_v46, %v866_v46 }
 0x1ff   : > { %v867_v50 = vsub.f32 %v3982_v42, %v865_v48  ;;  %v870_v51 = vsel %vm4612_vm0, %v868_v49, 0.0 }
 0x200   : > { %871 = vadd.xlane.f32.xlu0 %v870_v51 }
 0x201   : > { %v869_v52 = vmul.f32 %v867_v50, %v867_v50 }
 0x203   : > { %v873_v53 = vsel %vm4612_vm0, %v869_v52, 0.0 }
 0x204   : > { %874 = vadd.xlane.f32.xlu1 %v873_v53 }
 0x216   : > { %891 = vrot.lane.b32.xlu0 %v887_v56, %s3879_s25 }
 0x28d   : > { %v872_v0 = vpop.xlane.xlu0 %871 }
 0x28e   : > { %v876_v1 = vmul.f32 0.03125, %v872_v0 }
 0x290   : > { %v878_v2 = vadd.f32 1e-05, %v876_v1 }
 0x291   : > { %v875_v3 = vpop.xlane.xlu1 %874  ;;  %v892_v8 = vpop.permute.xlu0 %891 }
 0x292   : > { %3742 = vrsqrt.f32 %v878_v2  ;;  %v877_v4 = vmul.f32 0.03125, %v875_v3 }
 0x294   : > { %v879_v5 = vadd.f32 1e-05, %v877_v4 }
 0x296   : > { %3744 = vrsqrt.f32 %v879_v5  ;;  %v4100_v5 = vadd.s32 8, %v3958_v20 }
 0x29c   : > { %v3743_v6 = vpop.eup %3742 }
 0x29d   : > { %v882_v7 = vmul.f32 %v3743_v6, %v866_v46  ;;  %v4103_v6 = vand.u32 127, %v306_v16  ;;  %v328_v16 = vadd.s32 16, %v3958_v20 }
 0x29f   : > { %v888_v9 = vmul.f32 %v887_v56, %v882_v7  ;;  %v4105_v7 = vstv %s3011_s11  ;;  %vm453_vm3 = vcmp.ge.s32.totalorder %v4103_v6, 8  ;;  %vm513_vm9 = vcmp.ge.s32.totalorder %v4103_v6, 16 }
 0x2a0   : > { %v3745_v10 = vpop.eup %3744  ;;  %vm573_vm15 = vcmp.ge.s32.totalorder %v4103_v6, 24 }
 0x2a1   : > { %v883_v11 = vmul.f32 %v3745_v10, %v867_v50  ;;  %v894_v12 = vadd.f32 %v892_v8, %v888_v9  ;;  %v339_v9 = vadd.s32 %v4105_v7, %v4100_v5  ;;  %v338_v10 = vadd.s32 %v4105_v7, %v3958_v20 }
 0x2a3   : > { %v889_v13 = vmul.f32 %v887_v56, %v883_v11  ;;  %3234 = vmatprep.mubr.msk.f32.mxu0 %vm4612_vm0, %v894_v12  ;;  %v329_v11 = vadd.s32 24, %v3958_v20  ;;  %v400_v12 = vstv %s4107_s14  ;;  %vm347_vm5 = vcmp.le.s32.totalorder %v4103_v6, %v339_v9 }
 0x2a4   : > { %vm346_vm7 = vcmp.le.s32.totalorder %v4103_v6, %v338_v10  ;;  %vm401_vm8 = vcmp.lt.s32.totalorder %v4103_v6, %v400_v12 }
 0x2a5   : > { %v895_v14 = vadd.f32 %v892_v8, %v889_v13  ;;  %v463_v8 = vstv %s462_s12  ;;  %v523_v13 = vstv %s522_s16  ;;  %vm4135_vm12 = vmand %vm401_vm8, %vm346_vm7 }
 0x2a6   : > { %vm464_vm4 = vcmp.lt.s32.totalorder %v4103_v6, %v463_v8  ;;  %vm524_vm10 = vcmp.lt.s32.totalorder %v4103_v6, %v523_v13 }
 0x2a7   : > { %3235 = vmatmul.mubr.msk.f32.vlgmr.msra.gmra.mrb[0].mxu0 %vm4612_vm0, %v895_v14  ;;  %vm466_vm6 = vmand %vm453_vm3, %vm464_vm4  ;;  %v341_v14 = vadd.s32 %v4105_v7, %v329_v11 }
 0x2a8   : > { %vm4131_vm11 = vmand %vm466_vm6, %vm347_vm5  ;;  %vm633_vm6 = vcmp.ge.s32.totalorder %v4103_v6, 32 }
 0x2a9   : > { %vm349_vm14 = vcmp.le.s32.totalorder %v4103_v6, %v341_v14  ;;  %vm4144_vm5 = vmand %vm513_vm9, %vm524_vm10  ;;  %vm693_vm10 = vcmp.ge.s32.totalorder %v4103_v6, 40 }
 0x37a   : > { %v3236_v18 = vpop.f32.mrb[0].mxu0 }
 0x37b   : > { %v978_v19 = vadd.f32 %v3236_v18, %v899_v17  ;;  %v972_v21 = vpop.f32.mrb[1].mxu0  ;;  %v340_v18 = vadd.s32 %v4105_v7, %v328_v16 }
 0x37c   : > { %v973_v23 = vadd.f32 %v972_v21, %v899_v17  ;;  %v583_v17 = vstv %s582_s17  ;;  %v331_v21 = vadd.s32 40, %v3958_v20 }
 0x37d   : > { %991 = vrot.lane.b32.xlu0 %v978_v19, %s3880_s26  ;;  %v1002_v60 = vmul.f32 0.35355338, %v978_v19  ;;  %vm584_vm3 = vcmp.lt.s32.totalorder %v4103_v6, %v583_v17  ;;  %vm348_vm4 = vcmp.le.s32.totalorder %v4103_v6, %v340_v18 }
 0x37e   : > { %983 = vrot.lane.b32.xlu1 %v973_v23, %s3881_s27  ;;  %v1001_v25 = vmul.f32 0.35355338, %v973_v23  ;;  %v4039_v26 = vpack.i.bf16 %v978_v19, %v973_v23  ;;  %vm588_vm8 = vmand %vm573_vm15, %vm584_vm3 }
 0x37f   : > { %vm4172_vm9 = vmand %vm4144_vm5, %vm348_vm4  ;;  %vm753_vm5 = vcmp.ge.s32.totalorder %v4103_v6, 48 }
 0x380   : > { %3253 = vmatprep.mubr.msk.f32.mxu1 %vm4613_vm1, %v1001_v25  ;;  %v643_v25 = vstv %s642_s18  ;;  %vm4186_vm4 = vmand %vm588_vm8, %vm349_vm14  ;;  %vm813_vm14 = vcmp.ge.s32.totalorder %v4103_v6, 56 }
 0x381   : > { %997 = vrot.lane.b32.xlu0 %v978_v19, %s3882_s28  ;;  %vm644_vm7 = vcmp.lt.s32.totalorder %v4103_v6, %v643_v25 }
 0x382   : > { %985 = vrot.lane.b32.xlu1 %v978_v19, %s3881_s27  ;;  %v330_v19 = vadd.s32 32, %v3958_v20  ;;  %vm649_vm3 = vmand %vm633_vm6, %vm644_vm7  ;;  %vm4631_vm7 = vcmask 523264  }
 0x386   : > { %989 = vrot.lane.b32.xlu1 %v973_v23, %s3880_s26 }
 0x38a   : > { %995 = vrot.lane.b32.xlu1 %v973_v23, %s3882_s28  ;;  %v4621_v23 = vmov 0 }
 0x38b   : > { %v4622_v23 = vsel %vm4131_vm11, 4294967295, %v4621_v23 }
 0x38e   : > { %3619 = vrot.lane.b32.xlu1 %v4039_v26, %s3879_s25 }
 0x3ef   : > { %v992_v30 = vpop.permute.xlu0 %991 }
 0x3f0   : > { %v984_v27 = vpop.permute.xlu1 %983  ;;  %v1006_v2 = vmul.f32 0.35355338, %v992_v30 }
 0x3f1   : > { %v1003_v63 = vmul.f32 0.35355338, %v984_v27 }
 0x3f3   : > { %v998_v33 = vpop.permute.xlu0 %997 }
 0x3f4   : > { %v986_v28 = vpop.permute.xlu1 %985  ;;  %v1008_v4 = vmul.f32 0.35355338, %v998_v33 }
 0x3f5   : > { %v4048_v29 = vpack.i.bf16 %v986_v28, %v984_v27  ;;  %v1004_v0 = vmul.f32 0.35355338, %v986_v28  ;;  %v4623_v27 = vmov 0 }
 0x3f6   : > { %v4624_v27 = vsel %vm4135_vm12, 4294967295, %v4623_v27 }
 0x3f7   : > { %3624 = vrot.lane.b32.xlu0 %v4048_v29, %s3879_s25 }
 0x3f8   : > { %v990_v31 = vpop.permute.xlu1 %989 }
 0x3f9   : > { %v4052_v32 = vpack.i.bf16 %v992_v30, %v990_v31  ;;  %v1005_v1 = vmul.f32 0.35355338, %v990_v31  ;;  %v703_v31 = vstv %s702_s19 }
 0x3fa   : > { %vm704_vm0 = vcmp.lt.s32.totalorder %v4103_v6, %v703_v31 }
 0x3fb   : > { %3629 = vrot.lane.b32.xlu1 %v4052_v32, %s3879_s25  ;;  %vm710_vm6 = vmand %vm693_vm10, %vm704_vm0 }
 0x3fc   : > { %v996_v34 = vpop.permute.xlu1 %995 }
 0x3fd   : > { %v4056_v35 = vpack.i.bf16 %v998_v33, %v996_v34  ;;  %v1007_v3 = vmul.f32 0.35355338, %v996_v34  ;;  %v342_v33 = vadd.s32 %v4105_v7, %v330_v19  ;;  %v332_v34 = vadd.s32 48, %v3958_v20 }
 0x3ff   : > { %3634 = vrot.lane.b32.xlu0 %v4056_v35, %s3879_s25  ;;  %vm350_vm15 = vcmp.le.s32.totalorder %v4103_v6, %v342_v33 }
 0x400   : > { %v3620_v36 = vpop.permute.xlu1 %3619 }
 0x401   : > { %v3622_v37 = vunpack.i.h.bf16 %v3620_v36  ;;  %v3621_v39 = vunpack.i.l.bf16 %v3620_v36 }
 0x403   : > { %v3445_v41 = vpack.c.bf16 %v3622_v37, %v3621_v39  ;;  %v343_v39 = vadd.s32 %v4105_v7, %v331_v21 }
 0x405   : > { %3447 = vmatprep.subr.msk.bf16.mxu1 %vm4062_vm2, %v3445_v41 }
 0x406   : > { %3450 = vmatpush3.bf16.xpose.msk.msra.mxu1 %vm4062_vm2, %v3445_v41 }
 0x469   : > { %v3625_v43 = vpop.permute.xlu0 %3624 }
 0x46a   : > { %v3627_v44 = vunpack.i.h.bf16 %v3625_v43  ;;  %v3626_v45 = vunpack.i.l.bf16 %v3625_v43 }
 0x46c   : > { %v3451_v46 = vpack.c.bf16 %v3627_v44, %v3626_v45  ;;  %v333_v44 = vadd.s32 56, %v3958_v20  ;;  %v763_v45 = vstv %s762_s21 }
 0x46d   : > { %v3630_v47 = vpop.permute.xlu1 %3629 }
 0x46e   : > { %v3632_v48 = vunpack.i.h.bf16 %v3630_v47  ;;  %v3631_v49 = vunpack.i.l.bf16 %v3630_v47  ;;  %3453 = vmatprep.subr.msk.bf16.mxu1 %vm4062_vm2, %v3451_v46  ;;  %v4627_v47 = vmov 0 }
 0x46f   : > { %3456 = vmatpush3.bf16.xpose.msk.msra.mxu1 %vm4062_vm2, %v3451_v46  ;;  %v4628_v47 = vsel %vm4172_vm9, 4294967295, %v4627_v47 }
 0x470   : > { %v3457_v50 = vpack.c.bf16 %v3632_v48, %v3631_v49  ;;  %v823_v49 = vstv %s822_s22 }
 0x471   : > { %v3635_v51 = vpop.permute.xlu0 %3634  ;;  %vm824_vm8 = vcmp.lt.s32.totalorder %v4103_v6, %v823_v49 }
 0x472   : > { %v3637_v52 = vunpack.i.h.bf16 %v3635_v51  ;;  %v3636_v53 = vunpack.i.l.bf16 %v3635_v51  ;;  %3459 = vmatprep.subr.msk.bf16.mxu1 %vm4062_vm2, %v3457_v50  ;;  %v4629_v51 = vmov 0 }
 0x473   : > { %v4630_v51 = vsel %vm4186_vm4, 4294967295, %v4629_v51 }
 0x474   : > { %v3463_v56 = vpack.c.bf16 %v3637_v52, %v3636_v53 }
 0x477   : > { %3462 = vmatpush3.bf16.xpose.msk.msra.mxu1 %vm4062_vm2, %v3457_v50  ;;  %v344_v50 = vadd.s32 %v4105_v7, %v332_v34 }
 0x478   : > { %3465 = vmatprep.subr.msk.bf16.mxu1 %vm4062_vm2, %v3463_v56 }
 0x47f   : > { %3468 = vmatpush3.bf16.xpose.msk.msra.mxu1 %vm4062_vm2, %v3463_v56  ;;  %v345_v56 = vadd.s32 %v4105_v7, %v333_v44 }
 0x486   : > { %3254 = vmatmul.mubr.msk.f32.vlgmr.msra.gmra.mrb[0].mxu1 %vm4613_vm1, %v1002_v60 }
 0x487   : > { %3256 = vmatprep.mubr.msk.f32.mxu1 %vm4613_vm1, %v1003_v63 }
 0x48a   : > { %3257 = vmatmul.mubr.msk.f32.gmra.mrb[2].mxu1 %vm4613_vm1, %v1004_v0 }
 0x48b   : > { %3259 = vmatprep.mubr.msk.f32.mxu1 %vm4613_vm1, %v1005_v1 }
 0x48e   : > { %3260 = vmatmul.mubr.msk.f32.gmra.mrb[4].mxu1 %vm4613_vm1, %v1006_v2 }
 0x48f   : > { %3262 = vmatprep.mubr.msk.f32.mxu1 %vm4613_vm1, %v1007_v3 }
 0x492   : > { %3263 = vmatmul.mubr.msk.f32.gmra.mrb[6].mxu1 %vm4613_vm1, %v1008_v4  ;;  %vm764_vm1 = vcmp.lt.s32.totalorder %v4103_v6, %v763_v45 }
 0x493   : > { %vm771_vm0 = vmand %vm753_vm5, %vm764_vm1 }
 0x494   : > { %vm4644_vm5 = vmmov %vm4631_vm7 }
 0x559   : > { %v3255_v28 = vpop.f32.mrb[0].mxu1 }
 0x55a   : > { %v4152_v36 = vsel %vm4131_vm11, %v3255_v28, -1e+09  ;;  %v1132_v37 = vpop.f32.mrb[1].mxu1  ;;  %vm4636_vm11 = vmmov %vm4631_vm7 }
 0x55b   : > { %v1171_v41 = vsel %vm4135_vm12, %v1132_v37, -1e+09  ;;  %v1183_v43 = vsel %vm4614_vm13, %v4152_v36, -inf  ;;  %vm4197_vm12 = vmand %vm649_vm3, %vm350_vm15  ;;  %vm353_vm15 = vcmp.le.s32.totalorder %v4103_v6, %v345_v56 }
 0x55c   : > { %1184 = vmax.xlane.f32.xlu0 %v1183_v43  ;;  %v1180_v46 = vsel %vm4614_vm13, %v1171_v41, -inf  ;;  %vm351_vm13 = vcmp.le.s32.totalorder %v4103_v6, %v343_v39  ;;  %vm832_vm3 = vmand %vm813_vm14, %vm824_vm8 }
 0x55d   : > { %1181 = vmax.xlane.f32.xlu1 %v1180_v46  ;;  %v3258_v48 = vpop.f32.mrb[2].mxu1  ;;  %vm4206_vm10 = vmand %vm710_vm6, %vm351_vm13 }
 0x55e   : > { %v1142_v52 = vpop.f32.mrb[3].mxu1  ;;  %v1174_v0 = vsel %vm4186_vm4, %v3258_v48, -1e+09  ;;  %vm4221_vm1 = vmand %vm832_vm3, %vm353_vm15 }
 0x55f   : > { %v1173_v53 = vsel %vm4172_vm9, %v1142_v52, -1e+09  ;;  %vm352_vm9 = vcmp.le.s32.totalorder %v4103_v6, %v344_v50  ;;  %v1189_v7 = vsel %vm4631_vm7, %v1174_v0, -inf  ;;  %vm4641_vm13 = vmmov %vm4631_vm7 }
 0x560   : > { %v1186_v60 = vsel %vm4631_vm7, %v1173_v53, -inf  ;;  %vm4215_vm4 = vmand %vm771_vm0, %vm352_vm9 }
 0x561   : > { %1187 = vmax.xlane.f32.xlu0 %v1186_v60  ;;  %v3261_v1 = vpop.f32.mrb[4].mxu1  ;;  %vm4643_vm9 = vmmov %vm4631_vm7 }
 0x562   : > { %v1152_v3 = vpop.f32.mrb[5].mxu1  ;;  %v1176_v10 = vsel %vm4206_vm10, %v3261_v1, -1e+09  ;;  %vm4645_vm6 = vmmov %vm4644_vm5 }
 0x563   : > { %v1175_v4 = vsel %vm4197_vm12, %v1152_v3, -1e+09  ;;  %v1195_v13 = vsel %vm4641_vm13, %v1176_v10, -inf  ;;  %vm4646_vm14 = vmmov %vm4644_vm5 }
 0x564   : > { %v1192_v8 = vsel %vm4636_vm11, %v1175_v4, -inf  ;;  %vm4642_vm11 = vmmov %vm4631_vm7 }
 0x565   : > { %1190 = vmax.xlane.f32.xlu0 %v1189_v7  ;;  %1193 = vmax.xlane.f32.xlu1 %v1192_v8  ;;  %v3264_v11 = vpop.f32.mrb[6].mxu1  ;;  %vm4647_vm8 = vmmov %vm4644_vm5 }
 0x566   : > { %v1162_v6 = vpop.f32.mrb[7].mxu1  ;;  %v1178_v17 = vsel %vm4221_vm1, %v3264_v11, -1e+09  ;;  %vm4648_vm0 = vmmov %vm4644_vm5 }
 0x567   : > { %v1177_v12 = vsel %vm4215_vm4, %v1162_v6, -1e+09  ;;  %v1201_v18 = vsel %vm4643_vm9, %v1178_v17, -inf  ;;  %vm4649_vm15 = vmmov %vm4648_vm0 }
 0x568   : > { %v1198_v14 = vsel %vm4642_vm11, %v1177_v12, -inf  ;;  %vm4650_vm3 = vmmov %vm4648_vm0 }
 0x569   : > { %1196 = vmax.xlane.f32.xlu0 %v1195_v13  ;;  %1199 = vmax.xlane.f32.xlu1 %v1198_v14  ;;  %vm4651_vm7 = vmmov %vm4648_vm0 }
 0x56a   : > { %vm4652_vm13 = vmmov %vm4648_vm0 }
 0x56b   : > { %vm4653_vm11 = vmmov %vm4648_vm0 }
 0x56c   : > { %vm4654_vm9 = vmmov %vm4648_vm0 }
 0x56d   : > { %1202 = vmax.xlane.f32.xlu0 %v1201_v18 }
 0x57a   : > { %3639 = vrot.lane.b32.xlu1 %v4039_v26, %s3883_s23 }
 0x5e9   : > { %v1185_v19 = vpop.xlane.xlu0 %1184 }
 0x5ea   : > { %v1205_v21 = vsub.f32 %v4152_v36, %v1185_v19  ;;  %v1182_v25 = vpop.xlane.xlu1 %1181 }
 0x5eb   : > { %v1204_v28 = vsub.f32 %v1171_v41, %v1182_v25 }
 0x5ec   : > { %v1214_v30 = vmul.f32 1.442695, %v1205_v21 }
 0x5ed   : > { %v1212_v31 = vmul.f32 1.442695, %v1204_v28 }
 0x5ee   : > { %3746 = vpow2.f32 %v1214_v30  ;;  %v1188_v33 = vpop.xlane.xlu0 %1187 }
 0x5ef   : > { %3748 = vpow2.f32 %v1212_v31  ;;  %v1206_v34 = vsub.f32 %v1173_v53, %v1188_v33 }
 0x5f1   : > { %v1216_v37 = vmul.f32 1.442695, %v1206_v34 }
 0x5f2   : > { %v1191_v39 = vpop.xlane.xlu0 %1190  ;;  %v1194_v43 = vpop.xlane.xlu1 %1193 }
 0x5f3   : > { %3750 = vpow2.f32 %v1216_v37  ;;  %v1207_v44 = vsub.f32 %v1174_v0, %v1191_v39  ;;  %v1208_v45 = vsub.f32 %v1175_v4, %v1194_v43 }
 0x5f5   : > { %v1218_v46 = vmul.f32 1.442695, %v1207_v44  ;;  %v1220_v48 = vmul.f32 1.442695, %v1208_v45 }
 0x5f6   : > { %v1197_v26 = vpop.xlane.xlu0 %1196  ;;  %v1200_v49 = vpop.xlane.xlu1 %1199 }
 0x5f7   : > { %3752 = vpow2.f32 %v1218_v46  ;;  %v1209_v36 = vsub.f32 %v1176_v10, %v1197_v26  ;;  %v1210_v56 = vsub.f32 %v1177_v12, %v1200_v49 }
 0x5f8   : > { %v4235_v50 = vpop.eup %3746  ;;  %3754 = vpow2.f32 %v1220_v48 }
 0x5f9   : > { %v3749_v41 = vpop.eup %3748  ;;  %v1222_v52 = vmul.f32 1.442695, %v1209_v36  ;;  %v1231_v53 = vsel %vm4644_vm5, %v4235_v50, 0.0  ;;  %v1224_v10 = vmul.f32 1.442695, %v1210_v56  ;;  %vm4655_vm5 = vmmov %vm4648_vm0 }
 0x5fa   : > { %1232 = vadd.xlane.f32.xlu0 %v1231_v53  ;;  %v1203_v60 = vpop.xlane.xlu0 %1202  ;;  %v3640_v1 = vpop.permute.xlu1 %3639  ;;  %v1228_v0 = vsel %vm4645_vm6, %v3749_v41, 0.0  ;;  %vm4656_vm6 = vmmov %vm4648_vm0 }
 0x5fb   : > { %3756 = vpow2.f32 %v1222_v52  ;;  %v1211_v3 = vsub.f32 %v1178_v17, %v1203_v60  ;;  %v3642_v4 = vunpack.i.h.bf16 %v3640_v1  ;;  %v3641_v7 = vunpack.i.l.bf16 %v3640_v1  ;;  %1229 = vadd.xlane.f32.xlu1 %v1228_v0 }
 0x5fd   : > { %v4240_v8 = vpop.eup %3750  ;;  %v1226_v11 = vmul.f32 1.442695, %v1211_v3  ;;  %v3469_v6 = vpack.c.bf16 %v3642_v4, %v3641_v7 }
 0x5fe   : > { %v1234_v12 = vsel %vm4646_vm14, %v4240_v8, 0.0  ;;  %vm4657_vm14 = vmmov %vm4648_vm0 }
 0x5ff   : > { %3758 = vpow2.f32 %v1226_v11  ;;  %1235 = vadd.xlane.f32.xlu1 %v1234_v12  ;;  %3470 = vmatprep.subr.bf16.mxu0 %v3469_v6 }
 0x600   : > { %3472 = vmatpush3.bf16.msra.mxu0 %v3469_v6  ;;  %3760 = vpow2.f32 %v1224_v10 }
 0x601   : > { %v4244_v13 = vpop.eup %3752 }
 0x602   : > { %v4246_v14 = vpop.eup %3754  ;;  %v1237_v17 = vsel %vm4647_vm8, %v4244_v13, 0.0  ;;  %vm4658_vm8 = vmmov %vm4648_vm0 }
 0x603   : > { %1238 = vadd.xlane.f32.xlu0 %v1237_v17  ;;  %v1240_v18 = vsel %vm4648_vm0, %v4246_v14, 0.0 }
 0x604   : > { %1241 = vadd.xlane.f32.xlu1 %v1240_v18 }
 0x605   : > { %v4252_v19 = vpop.eup %3756 }
 0x606   : > { %v1243_v21 = vsel %vm4649_vm15, %v4252_v19, 0.0  ;;  %vm1447_vm15 = vcmask 130048  }
 0x607   : > { %1244 = vadd.xlane.f32.xlu0 %v1243_v21 }
 0x609   : > { %v4256_v25 = vpop.eup %3758 }
 0x60a   : > { %v1249_v28 = vsel %vm4650_vm3, %v4256_v25, 0.0  ;;  %v3761_v30 = vpop.eup %3760  ;;  %vm1450_vm3 = vcmask 195584  }
 0x60b   : > { %1250 = vadd.xlane.f32.xlu0 %v1249_v28  ;;  %v1246_v31 = vsel %vm4651_vm7, %v3761_v30, 0.0  ;;  %vm4659_vm7 = vcmask 64512  }
 0x60f   : > { %1247 = vadd.xlane.f32.xlu0 %v1246_v31 }
 0x615   : > { %3649 = vrot.lane.b32.xlu1 %v4052_v32, %s3883_s23 }
 0x619   : > { %3654 = vrot.lane.b32.xlu1 %v4056_v35, %s3883_s23 }
 0x61d   : > { %3659 = vrot.lane.b32.xlu1 %v3658_v59, %s3884_s29 }
 0x625   : > { %3644 = vrot.lane.b32.xlu0 %v4048_v29, %s3883_s23 }
 0x687   : > { %v1233_v34 = vpop.xlane.xlu0 %1232 }
 0x688   : > { %v1230_v33 = vpop.xlane.xlu1 %1229 }
 0x689   : > { %3762 = vrcp.f32 %v1230_v33 }
 0x68a   : > { %3764 = vrcp.f32 %v1233_v34 }
 0x68c   : > { %v1236_v37 = vpop.xlane.xlu1 %1235 }
 0x68d   : > { %3766 = vrcp.f32 %v1236_v37 }
 0x690   : > { %v1239_v39 = vpop.xlane.xlu0 %1238 }
 0x691   : > { %v1242_v45 = vpop.xlane.xlu1 %1241  ;;  %3768 = vrcp.f32 %v1239_v39 }
 0x692   : > { %3770 = vrcp.f32 %v1242_v45 }
 0x693   : > { %v3763_v43 = vpop.eup %3762 }
 0x694   : > { %v1245_v44 = vpop.xlane.xlu0 %1244  ;;  %v1253_v32 = vmul.f32 %v3763_v43, %v3749_v41  ;;  %v3765_v60 = vpop.eup %3764 }
 0x695   : > { %v3650_v46 = vpop.permute.xlu1 %3649  ;;  %3772 = vrcp.f32 %v1245_v44  ;;  %v1255_v0 = vmul.f32 %v3765_v60, %v4235_v50 }
 0x696   : > { %3281 = vmatprep.mubr.msk.f32.mxu0 %vm4652_vm13, %v1253_v32  ;;  %v3652_v26 = vunpack.i.h.bf16 %v3650_v46  ;;  %v3651_v49 = vunpack.i.l.bf16 %v3650_v46  ;;  %vm4660_vm13 = vmmov %vm4659_vm7 }
 0x697   : > { %v3767_v1 = vpop.eup %3766 }
 0x698   : > { %v1251_v35 = vpop.xlane.xlu0 %1250  ;;  %v3477_v52 = vpack.c.bf16 %v3652_v26, %v3651_v49  ;;  %v1257_v4 = vmul.f32 %v3767_v1, %v4240_v8 }
 0x699   : > { %v3655_v58 = vpop.permute.xlu1 %3654 }
 0x69a   : > { %v3657_v56 = vunpack.i.h.bf16 %v3655_v58  ;;  %v3656_v53 = vunpack.i.l.bf16 %v3655_v58 }
 0x69b   : > { %v3769_v3 = vpop.eup %3768 }
 0x69c   : > { %v1248_v29 = vpop.xlane.xlu0 %1247  ;;  %v3481_v41 = vpack.c.bf16 %v3657_v56, %v3656_v53  ;;  %v3771_v7 = vpop.eup %3770  ;;  %v1259_v10 = vmul.f32 %v3769_v3, %v4244_v13  ;;  %v3663_v13 = vpack.i.bf16 %v4026_v62, %v4023_v61  ;;  %v1555_v56 = vrot.slane %v4001_v55, %v3967_v22 }
 0x69d   : > { %3774 = vrcp.f32 %v1248_v29  ;;  %v1261_v6 = vmul.f32 %v3771_v7, %v4246_v14  ;;  %v3660_v14 = vpop.permute.xlu1 %3659 }
 0x69e   : > { %3776 = vrcp.f32 %v1251_v35  ;;  %3664 = vrot.lane.b32.xlu1 %v3663_v13, %s3884_s29  ;;  %v3662_v21 = vunpack.i.h.bf16 %v3660_v14  ;;  %v3661_v28 = vunpack.i.l.bf16 %v3660_v14 }
 0x69f   : > { %v3773_v11 = vpop.eup %3772 }
 0x6a0   : > { %v3645_v48 = vpop.permute.xlu0 %3644  ;;  %v1263_v50 = vmul.f32 %v3773_v11, %v4252_v19  ;;  %v3485_v31 = vpack.c.bf16 %v3662_v21, %v3661_v28  ;;  %v850_v21 = vld [vmem:[%s4009_s24 + $0x8] sm:$0xff]  ;;  %v852_v28 = vld [vmem:[%s4009_s24 + $0x18] sm:$0xff] }
 0x6a1   : > { %v3647_v36 = vunpack.i.h.bf16 %v3645_v48  ;;  %v3646_v57 = vunpack.i.l.bf16 %v3645_v48 }
 0x6a3   : > { %v3473_v59 = vpack.c.bf16 %v3647_v36, %v3646_v57 }
 0x6a5   : > { %3474 = vmatprep.subr.bf16.mxu0 %v3473_v59 }
 0x6a6   : > { %3476 = vmatpush3.bf16.msra.mxu0 %v3473_v59 }
 0x6a7   : > { %3478 = vmatprep.subr.bf16.mxu0 %v3477_v52  ;;  %v3775_v12 = vpop.eup %3774 }
 0x6a8   : > { %v3777_v17 = vpop.eup %3776  ;;  %v1265_v18 = vmul.f32 %v3775_v12, %v3761_v30 }
 0x6a9   : > { %v1267_v8 = vmul.f32 %v3777_v17, %v4256_v25 }
 0x6aa   : > { %3480 = vmatpush3.bf16.msra.mxu0 %v3477_v52 }
 0x6ab   : > { %3482 = vmatprep.subr.bf16.mxu0 %v3481_v41 }
 0x6ae   : > { %3484 = vmatpush3.bf16.msra.mxu0 %v3481_v41 }
 0x6af   : > { %3486 = vmatprep.subr.bf16.mxu0 %v3485_v31 }
 0x6b1   : > { %3282 = vmatmul.mubr.msk.f32.vlgmr.msra.gmra.mrb[2].mxu0 %vm4653_vm11, %v1255_v0  ;;  %vm4661_vm11 = vcmask 261120  }
 0x6b2   : > { %3284 = vmatprep.mubr.msk.f32.mxu0 %vm4654_vm9, %v1257_v4  ;;  %3488 = vmatpush3.bf16.msra.mxu0 %v3485_v31  ;;  %vm4662_vm9 = vmmov %vm4661_vm11  ;;  %v3493_v31 = vpack.c.bf16 %v852_v28, %v850_v21 }
 0x6b5   : > { %3285 = vmatmul.mubr.msk.f32.gmra.mrb[4].mxu0 %vm4655_vm5, %v1259_v10  ;;  %vm4663_vm5 = vmmov %vm4662_vm9  ;;  %v1586_v10 = vsub.s32 5, %v3958_v20 }
 0x6b6   : > { %3287 = vmatprep.mubr.msk.f32.mxu0 %vm4656_vm6, %v1261_v6  ;;  %vm4664_vm6 = vmmov %vm4663_vm5 }
 0x6b9   : > { %3288 = vmatmul.mubr.msk.f32.gmra.mrb[6].mxu0 %vm4657_vm14, %v1263_v50  ;;  %vm4665_vm14 = vmmov %vm4663_vm5 }
 0x6ba   : > { %3290 = vmatprep.mubr.msk.f32.mxu0 %vm4658_vm8, %v1265_v18  ;;  %vm4666_vm8 = vmmov %vm4663_vm5 }
 0x6bd   : > { %3291 = vmatmul.mubr.msk.f32.gmra.mrb[8].mxu0 %vm4648_vm0, %v1267_v8  ;;  %vm4667_vm0 = vmmov %vm4663_vm5 }
 0x710   : > { %v3665_v19 = vpop.permute.xlu1 %3664 }
 0x711   : > { %v3667_v30 = vunpack.i.h.bf16 %v3665_v19  ;;  %v3666_v33 = vunpack.i.l.bf16 %v3665_v19  ;;  %v854_v19 = vld [vmem:[%s4009_s24 + $0x28] sm:$0xff] }
 0x713   : > { %v3489_v34 = vpack.c.bf16 %v3667_v30, %v3666_v33  ;;  %v856_v30 = vld [vmem:[%s4009_s24 + $0x38] sm:$0xff] }
 0x714   : > { %v3497_v33 = vpack.c.bf16 %v856_v30, %v854_v19 }
 0x715   : > { %3490 = vmatprep.subr.bf16.mxu0 %v3489_v34 }
 0x716   : > { %3492 = vmatpush3.bf16.msra.mxu0 %v3489_v34  ;;  %v3668_v34 = vpack.i.bf16 %v852_v28, %v850_v21 }
 0x717   : > { %3494 = vmatprep.subr.bf16.mxu0 %v3493_v31 }
 0x784   : > { %v3283_v25 = vpop.f32.mrb[2].mxu0 }
 0x785   : > { %v1382_v37 = vpop.f32.mrb[3].mxu0 }
 0x788   : > { %v3286_v39 = vpop.f32.mrb[4].mxu0 }
 0x789   : > { %1425 = vrot.lane.b32.xlu0 %v3286_v39, %s3885_s30  ;;  %v1392_v61 = vpop.f32.mrb[5].mxu0 }
 0x78a   : > { %1423 = vrot.lane.b32.xlu1 %v1392_v61, %s3885_s30 }
 0x78c   : > { %v3289_v62 = vpop.f32.mrb[6].mxu0 }
 0x78d   : > { %1433 = vrot.lane.b32.xlu0 %v3289_v62, %s3886_s8  ;;  %v1402_v43 = vpop.f32.mrb[7].mxu0 }
 0x78e   : > { %1431 = vrot.lane.b32.xlu1 %v1402_v43, %s3886_s8 }
 0x790   : > { %v3292_v44 = vpop.f32.mrb[8].mxu0 }
 0x791   : > { %1441 = vrot.lane.b32.xlu0 %v3292_v44, %s3887_s9  ;;  %v1412_v32 = vpop.f32.mrb[9].mxu0 }
 0x792   : > { %1439 = vrot.lane.b32.xlu1 %v1412_v32, %s3887_s9 }
 0x7fb   : > { %v1426_v45 = vpop.permute.xlu0 %1425 }
 0x7fc   : > { %v1424_v35 = vpop.permute.xlu1 %1423  ;;  %v1446_v49 = vsel %vm4660_vm13, %v3283_v25, %v1426_v45  ;;  %v3673_v25 = vpack.i.bf16 %v856_v30, %v854_v19  ;;  %vm4669_vm13 = vcmask 523264   ;;  %v4350_v30 = vsub.s32 3, %v3958_v20 }
 0x7fd   : > { %v1445_v48 = vsel %vm4659_vm7, %v1382_v37, %v1424_v35  ;;  %vm4668_vm7 = vmmov %vm4667_vm0 }
 0x7ff   : > { %v1434_v46 = vpop.permute.xlu0 %1433 }
 0x800   : > { %v1432_v29 = vpop.permute.xlu1 %1431  ;;  %v1449_v58 = vsel %vm1447_vm15, %v1446_v49, %v1434_v46 }
 0x801   : > { %v1448_v36 = vsel %vm1447_vm15, %v1445_v48, %v1432_v29 }
 0x803   : > { %v1442_v26 = vpop.permute.xlu0 %1441 }
 0x804   : > { %v1440_v57 = vpop.permute.xlu1 %1439  ;;  %v1452_v52 = vsel %vm1450_vm3, %v1449_v58, %v1442_v26 }
 0x805   : > { %v1451_v59 = vsel %vm1450_vm3, %v1448_v36, %v1440_v57 }
 0x806   : > { %3301 = vmatprep.mubr.msk.f32.mxu0 %vm4661_vm11, %v1451_v59  ;;  %vm4333_vm11 = vmpackc.low %vm4669_vm13, %vm4669_vm13 }
 0x807   : > { %3302 = vmatmul.mubr.msk.f32.vlgmr.msra.gmra.mrb[10].mxu0 %vm4662_vm9, %v1452_v52  ;;  %vm4672_vm9 = vmmov %vm4669_vm13 }
 0x808   : > { %3496 = vmatpush3.bf16.msra.mxu0 %v3493_v31  ;;  %vm4678_vm13 = vmmov %vm4667_vm0 }
 0x809   : > { %3498 = vmatprep.subr.bf16.mxu0 %v3497_v33 }
 0x80c   : > { %3500 = vmatpush3.bf16.msra.mxu0 %v3497_v33  ;;  %v1700_v33 = vrot.slane %v4001_v55, %v4350_v30 }
 0x8da   : > { %v3303_v53 = vpop.f32.mrb[10].mxu0 }
 0x8db   : > { %v1551_v41 = vadd.f32 %v3303_v53, %v3982_v42  ;;  %v1541_v60 = vpop.f32.mrb[11].mxu0 }
 0x8dc   : > { %v1550_v1 = vadd.f32 %v1541_v60, %v3978_v38  ;;  %v1587_v38 = vrot.slane %v4001_v55, %v1586_v10 }
 0x8dd   : > { %v4306_v0 = vadd.f32 %v1555_v56, %v1551_v41 }
 0x8de   : > { %v4308_v3 = vadd.f32 %v1555_v56, %v1550_v1 }
 0x8df   : > { %v1561_v4 = vsel %vm4663_vm5, %v4306_v0, 0.0  ;;  %vm4673_vm5 = vmmov %vm4672_vm9 }
 0x8e0   : > { %1562 = vadd.xlane.f32.xlu0 %v1561_v4  ;;  %v1558_v7 = vsel %vm4664_vm6, %v4308_v3, 0.0  ;;  %v1599_v4 = vrot.slane %v4001_v55, %v3971_v24  ;;  %vm4674_vm6 = vmmov %vm4667_vm0 }
 0x8e1   : > { %1559 = vadd.xlane.f32.xlu1 %v1558_v7 }
 0x8f2   : > { %1591 = vrot.lane.b32.xlu1 %v1587_v38, %s3879_s25 }
 0x8f6   : > { %3674 = vrot.lane.b32.xlu1 %v3673_v25, %s3883_s23 }
 0x96d   : > { %v1563_v42 = vpop.xlane.xlu0 %1562 }
 0x96e   : > { %v1565_v11 = vmul.f32 0.03125, %v1563_v42  ;;  %v1560_v6 = vpop.xlane.xlu1 %1559 }
 0x96f   : > { %v1564_v12 = vmul.f32 0.03125, %v1560_v6 }
 0x970   : > { %v1567_v50 = vsub.f32 %v4306_v0, %v1565_v11 }
 0x971   : > { %v1566_v17 = vsub.f32 %v4308_v3, %v1564_v12 }
 0x972   : > { %v1569_v13 = vmul.f32 %v1567_v50, %v1567_v50  ;;  %v1592_v35 = vpop.permute.xlu1 %1591 }
 0x973   : > { %v1568_v18 = vmul.f32 %v1566_v17, %v1566_v17 }
 0x974   : > { %v1573_v14 = vsel %vm4666_vm8, %v1569_v13, 0.0  ;;  %vm4676_vm8 = vmmov %vm4667_vm0 }
 0x975   : > { %v1570_v8 = vsel %vm4665_vm14, %v1568_v18, 0.0  ;;  %vm4675_vm14 = vmmov %vm4667_vm0 }
 0x976   : > { %1571 = vadd.xlane.f32.xlu0 %v1570_v8  ;;  %v3675_v53 = vpop.permute.xlu1 %3674 }
 0x977   : > { %v3677_v41 = vunpack.i.h.bf16 %v3675_v53  ;;  %v3676_v60 = vunpack.i.l.bf16 %v3675_v53  ;;  %v4386_v53 = vld [vmem:[%s4009_s24 + $0x70] sm:$0xff] }
 0x979   : > { %v3507_v1 = vpack.c.bf16 %v3677_v41, %v3676_v60 }
 0x97a   : > { %1574 = vadd.xlane.f32.xlu0 %v1573_v14 }
 0x990   : > { %3669 = vrot.lane.b32.xlu0 %v3668_v34, %s3883_s23 }
 0xa03   : > { %v1572_v37 = vpop.xlane.xlu0 %1571 }
 0xa04   : > { %v1576_v39 = vmul.f32 0.03125, %v1572_v37 }
 0xa06   : > { %v1578_v61 = vadd.f32 1e-05, %v1576_v39 }
 0xa07   : > { %v1575_v62 = vpop.xlane.xlu0 %1574 }
 0xa08   : > { %3778 = vrsqrt.f32 %v1578_v61  ;;  %v1577_v43 = vmul.f32 0.03125, %v1575_v62 }
 0xa0a   : > { %v1579_v44 = vadd.f32 1e-05, %v1577_v43 }
 0xa0b   : > { %v3670_v57 = vpop.permute.xlu0 %3669 }
 0xa0c   : > { %3780 = vrsqrt.f32 %v1579_v44  ;;  %v3672_v58 = vunpack.i.h.bf16 %v3670_v57  ;;  %v3671_v59 = vunpack.i.l.bf16 %v3670_v57  ;;  %v4374_v57 = vld [vmem:[%s4009_s24 + $0x40] sm:$0xff] }
 0xa0e   : > { %v3501_v52 = vpack.c.bf16 %v3672_v58, %v3671_v59  ;;  %v4377_v58 = vld [vmem:[%s4009_s24 + $0x50] sm:$0xff] }
 0xa0f   : > { %v3513_v59 = vpack.c.bf16 %v4377_v58, %v4374_v57 }
 0xa10   : > { %3503 = vmatprep.subr.msk.bf16.mxu1 %vm4333_vm11, %v3501_v52 }
 0xa11   : > { %3506 = vmatpush3.bf16.xpose.msk.msra.mxu1 %vm4333_vm11, %v3501_v52  ;;  %3514 = vmatprep.subr.bf16.mxu0 %v3513_v59  ;;  %v4383_v52 = vld [vmem:[%s4009_s24 + $0x60] sm:$0xff] }
 0xa12   : > { %v3779_v32 = vpop.eup %3778  ;;  %3509 = vmatprep.subr.msk.bf16.mxu1 %vm4333_vm11, %v3507_v1  ;;  %v3517_v41 = vpack.c.bf16 %v4386_v53, %v4383_v52 }
 0xa13   : > { %v1582_v45 = vmul.f32 %v3779_v32, %v1566_v17 }
 0xa15   : > { %v1588_v46 = vmul.f32 %v1587_v38, %v1582_v45 }
 0xa16   : > { %v3781_v29 = vpop.eup %3780 }
 0xa17   : > { %v1583_v48 = vmul.f32 %v3781_v29, %v1567_v50  ;;  %v1594_v26 = vadd.f32 %v1592_v35, %v1588_v46 }
 0xa19   : > { %v1589_v49 = vmul.f32 %v1587_v38, %v1583_v48  ;;  %3312 = vmatprep.mubr.msk.f32.mxu0 %vm4667_vm0, %v1594_v26  ;;  %3512 = vmatpush3.bf16.xpose.msk.msra.mxu1 %vm4333_vm11, %v3507_v1 }
 0xa1b   : > { %v1595_v36 = vadd.f32 %v1592_v35, %v1589_v49  ;;  %v4369_v49 = vld [vmem:[%s3995_s20 + $0x8] sm:$0x3f]  ;;  %s3100_s20 = sld [smem:[#allocation3 + $0x1]] }
 0xa1d   : > { %3313 = vmatmul.mubr.msk.f32.vlgmr.msra.gmra.mrb[12].mxu0 %vm4668_vm7, %v1595_v36  ;;  %v1844_v36 = vrot.slane %v4369_v49, %v3998_v54  ;;  %vm4677_vm7 = vmmov %vm4667_vm0 }
 0xa1e   : > { %3516 = vmatpush3.bf16.msra.mxu0 %v3513_v59 }
 0xa1f   : > { %3518 = vmatprep.subr.bf16.mxu0 %v3517_v41 }
 0xa22   : > { %3520 = vmatpush3.bf16.msra.mxu0 %v3517_v41 }
 0xaf0   : > { %v3314_v7 = vpop.f32.mrb[12].mxu0 }
 0xaf1   : > { %v1678_v38 = vadd.f32 %v3314_v7, %v1599_v4  ;;  %v1672_v42 = vpop.f32.mrb[13].mxu0 }
 0xaf2   : > { %v1673_v11 = vadd.f32 %v1672_v42, %v1599_v4 }
 0xaf3   : > { %v3044_v6 = vmul.f32 -1.702, %v1678_v38 }
 0xaf4   : > { %v3043_v12 = vmul.f32 -1.702, %v1673_v11 }
 0xaf5   : > { %v1687_v50 = vmul.f32 1.442695, %v3044_v6 }
 0xaf6   : > { %v1685_v17 = vmul.f32 1.442695, %v3043_v12 }
 0xaf7   : > { %3782 = vpow2.f32 %v1687_v50 }
 0xaf8   : > { %3784 = vpow2.f32 %v1685_v17 }
 0xb01   : > { %v3783_v18 = vpop.eup %3782 }
 0xb02   : > { %v3785_v8 = vpop.eup %3784  ;;  %v1690_v13 = vadd.f32 1.0, %v3783_v18 }
 0xb03   : > { %v1689_v14 = vadd.f32 1.0, %v3785_v8 }
 0xb04   : > { %3786 = vrcp.f32 %v1690_v13 }
 0xb05   : > { %3788 = vrcp.f32 %v1689_v14 }
 0xb0e   : > { %v3787_v21 = vpop.eup %3786 }
 0xb0f   : > { %v3789_v28 = vpop.eup %3788  ;;  %v1696_v19 = vmul.f32 %v3787_v21, %v1678_v38  ;;  %v1856_v21 = vrot.slane %v4369_v49, %v4033_v15 }
 0xb10   : > { %v1695_v31 = vmul.f32 %v3789_v28, %v1673_v11 }
 0xb12   : > { %3323 = vmatprep.mubr.msk.f32.mxu1 %vm4672_vm9, %v1695_v31  ;;  %vm4679_vm9 = vcmask 64512  }
 0xb13   : > { %3324 = vmatmul.mubr.msk.f32.vlgmr.msra.gmra.mrb[8].mxu1 %vm4673_vm5, %v1696_v19  ;;  %vm4680_vm5 = vmmov %vm4679_vm9 }
 0xbe6   : > { %v3325_v34 = vpop.f32.mrb[8].mxu1 }
 0xbe7   : > { %v1799_v25 = vadd.f32 %v3325_v34, %v1700_v33  ;;  %v1793_v37 = vpop.f32.mrb[9].mxu1 }
 0xbe8   : > { %v1794_v39 = vadd.f32 %v1793_v37, %v1700_v33 }
 0xbe9   : > { %v4355_v61 = vadd.f32 %v1799_v25, %v4306_v0 }
 0xbea   : > { %v4358_v62 = vadd.f32 %v1794_v39, %v4308_v3 }
 0xbeb   : > { %v1818_v43 = vsel %vm4674_vm6, %v4355_v61, 0.0  ;;  %vm4681_vm6 = vmmov %vm4680_vm5 }
 0xbec   : > { %1819 = vadd.xlane.f32.xlu0 %v1818_v43  ;;  %v1815_v44 = vsel %vm4675_vm14, %v4358_v62, 0.0  ;;  %vm4682_vm14 = vmmov %vm4680_vm5 }
 0xbed   : > { %1816 = vadd.xlane.f32.xlu1 %v1815_v44 }
 0xc79   : > { %v1820_v55 = vpop.xlane.xlu0 %1819 }
 0xc7a   : > { %v1822_v32 = vmul.f32 0.03125, %v1820_v55  ;;  %v1817_v45 = vpop.xlane.xlu1 %1816 }
 0xc7b   : > { %v1821_v35 = vmul.f32 0.03125, %v1817_v45 }
 0xc7c   : > { %v1824_v0 = vsub.f32 %v4355_v61, %v1822_v32 }
 0xc7d   : > { %v1823_v3 = vsub.f32 %v4358_v62, %v1821_v35 }
 0xc7e   : > { %v1826_v46 = vmul.f32 %v1824_v0, %v1824_v0 }
 0xc7f   : > { %v1825_v29 = vmul.f32 %v1823_v3, %v1823_v3 }
 0xc80   : > { %v1830_v48 = vsel %vm4676_vm8, %v1826_v46, 0.0  ;;  %vm4683_vm8 = vmmov %vm4680_vm5 }
 0xc81   : > { %1831 = vadd.xlane.f32.xlu1 %v1830_v48  ;;  %v1827_v26 = vsel %vm4667_vm0, %v1825_v29, 0.0  ;;  %vm4684_vm0 = vmmov %vm4680_vm5 }
 0xc82   : > { %1828 = vadd.xlane.f32.xlu0 %v1827_v26 }
 0xc98   : > { %1848 = vrot.lane.b32.xlu0 %v1844_v36, %s3879_s25 }
 0xd0e   : > { %v1832_v60 = vpop.xlane.xlu1 %1831 }
 0xd0f   : > { %v1834_v1 = vmul.f32 0.03125, %v1832_v60  ;;  %v1829_v4 = vpop.xlane.xlu0 %1828 }
 0xd10   : > { %v1833_v7 = vmul.f32 0.03125, %v1829_v4 }
 0xd11   : > { %v1836_v38 = vadd.f32 1e-05, %v1834_v1 }
 0xd12   : > { %v1835_v42 = vadd.f32 1e-05, %v1833_v7 }
 0xd13   : > { %3790 = vrsqrt.f32 %v1836_v38  ;;  %v1849_v17 = vpop.permute.xlu0 %1848 }
 0xd14   : > { %3792 = vrsqrt.f32 %v1835_v42 }
 0xd1d   : > { %v3791_v11 = vpop.eup %3790 }
 0xd1e   : > { %v3793_v6 = vpop.eup %3792  ;;  %v1840_v12 = vmul.f32 %v3791_v11, %v1824_v0 }
 0xd1f   : > { %v1839_v50 = vmul.f32 %v3793_v6, %v1823_v3 }
 0xd20   : > { %v1846_v18 = vmul.f32 %v1844_v36, %v1840_v12 }
 0xd21   : > { %v1845_v8 = vmul.f32 %v1844_v36, %v1839_v50 }
 0xd22   : > { %v1852_v14 = vadd.f32 %v1849_v17, %v1846_v18 }
 0xd23   : > { %v1851_v13 = vadd.f32 %v1849_v17, %v1845_v8 }
 0xd25   : > { %3334 = vmatprep.mubr.msk.f32.mxu0 %vm4677_vm7, %v1851_v13  ;;  %vm4685_vm7 = vmmov %vm4684_vm0 }
 0xd26   : > { %3335 = vmatmul.mubr.msk.f32.vlgmr.msra.gmra.mrb[14].mxu0 %vm4678_vm13, %v1852_v14  ;;  %vm4687_vm13 = vnez %v4622_v23 }
 0xdf9   : > { %v3336_v28 = vpop.f32.mrb[14].mxu0 }
 0xdfa   : > { %v1935_v31 = vadd.f32 %v3336_v28, %v1856_v21  ;;  %v1929_v19 = vpop.f32.mrb[15].mxu0 }
 0xdfb   : > { %v1930_v33 = vadd.f32 %v1929_v19, %v1856_v21 }
 0xdfc   : > { %1948 = vrot.lane.b32.xlu0 %v1935_v31, %s3880_s26  ;;  %v1959_v12 = vmul.f32 0.35355338, %v1935_v31 }
 0xdfd   : > { %1940 = vrot.lane.b32.xlu1 %v1930_v33, %s3881_s27  ;;  %v1958_v34 = vmul.f32 0.35355338, %v1930_v33  ;;  %v4396_v25 = vpack.i.bf16 %v1935_v31, %v1930_v33 }
 0xdff   : > { %3353 = vmatprep.mubr.msk.f32.mxu1 %vm4679_vm9, %v1958_v34  ;;  %vm4688_vm9 = vnez %v4624_v27 }
 0xe00   : > { %1954 = vrot.lane.b32.xlu0 %v1935_v31, %s3882_s28 }
 0xe01   : > { %1942 = vrot.lane.b32.xlu1 %v1935_v31, %s3881_s27 }
 0xe05   : > { %1946 = vrot.lane.b32.xlu1 %v1930_v33, %s3880_s26 }
 0xe09   : > { %1952 = vrot.lane.b32.xlu1 %v1930_v33, %s3882_s28 }
 0xe0d   : > { %3679 = vrot.lane.b32.xlu1 %v4396_v25, %s3879_s25 }
 0xe6e   : > { %v1949_v44 = vpop.permute.xlu0 %1948 }
 0xe6f   : > { %v1941_v37 = vpop.permute.xlu1 %1940  ;;  %v1963_v8 = vmul.f32 0.35355338, %v1949_v44 }
 0xe70   : > { %v1960_v50 = vmul.f32 0.35355338, %v1941_v37 }
 0xe72   : > { %v1955_v45 = vpop.permute.xlu0 %1954 }
 0xe73   : > { %v1943_v39 = vpop.permute.xlu1 %1942  ;;  %v1965_v40 = vmul.f32 0.35355338, %v1955_v45 }
 0xe74   : > { %v4405_v43 = vpack.i.bf16 %v1943_v39, %v1941_v37  ;;  %v1961_v17 = vmul.f32 0.35355338, %v1943_v39 }
 0xe76   : > { %3684 = vrot.lane.b32.xlu0 %v4405_v43, %s3879_s25 }
 0xe77   : > { %v1947_v55 = vpop.permute.xlu1 %1946 }
 0xe78   : > { %v4409_v32 = vpack.i.bf16 %v1949_v44, %v1947_v55  ;;  %v1962_v18 = vmul.f32 0.35355338, %v1947_v55 }
 0xe7a   : > { %3689 = vrot.lane.b32.xlu1 %v4409_v32, %s3879_s25 }
 0xe7b   : > { %v1953_v35 = vpop.permute.xlu1 %1952 }
 0xe7c   : > { %v4413_v0 = vpack.i.bf16 %v1955_v45, %v1953_v35  ;;  %v1964_v13 = vmul.f32 0.35355338, %v1953_v35 }
 0xe7e   : > { %3694 = vrot.lane.b32.xlu0 %v4413_v0, %s3879_s25 }
 0xe7f   : > { %v3680_v3 = vpop.permute.xlu1 %3679 }
 0xe80   : > { %v3682_v46 = vunpack.i.h.bf16 %v3680_v3  ;;  %v3681_v29 = vunpack.i.l.bf16 %v3680_v3 }
 0xe82   : > { %v3521_v48 = vpack.c.bf16 %v3682_v46, %v3681_v29 }
 0xe84   : > { %3523 = vmatprep.subr.msk.bf16.mxu1 %vm4062_vm2, %v3521_v48 }
 0xe85   : > { %3526 = vmatpush3.bf16.xpose.msk.msra.mxu1 %vm4062_vm2, %v3521_v48 }
 0xee8   : > { %v3685_v26 = vpop.permute.xlu0 %3684 }
 0xee9   : > { %v3687_v36 = vunpack.i.h.bf16 %v3685_v26  ;;  %v3686_v59 = vunpack.i.l.bf16 %v3685_v26 }
 0xeeb   : > { %v3527_v41 = vpack.c.bf16 %v3687_v36, %v3686_v59 }
 0xeec   : > { %v3690_v60 = vpop.permute.xlu1 %3689 }
 0xeed   : > { %v3692_v1 = vunpack.i.h.bf16 %v3690_v60  ;;  %v3691_v4 = vunpack.i.l.bf16 %v3690_v60  ;;  %3529 = vmatprep.subr.msk.bf16.mxu1 %vm4062_vm2, %v3527_v41 }
 0xeee   : > { %3532 = vmatpush3.bf16.xpose.msk.msra.mxu1 %vm4062_vm2, %v3527_v41 }
 0xeef   : > { %v3533_v7 = vpack.c.bf16 %v3692_v1, %v3691_v4 }
 0xef0   : > { %v3695_v38 = vpop.permute.xlu0 %3694 }
 0xef1   : > { %v3697_v42 = vunpack.i.h.bf16 %v3695_v38  ;;  %v3696_v11 = vunpack.i.l.bf16 %v3695_v38  ;;  %3535 = vmatprep.subr.msk.bf16.mxu1 %vm4062_vm2, %v3533_v7 }
 0xef3   : > { %v3539_v6 = vpack.c.bf16 %v3697_v42, %v3696_v11 }
 0xef6   : > { %3538 = vmatpush3.bf16.xpose.msk.msra.mxu1 %vm4062_vm2, %v3533_v7 }
 0xef7   : > { %3541 = vmatprep.subr.msk.bf16.mxu1 %vm4062_vm2, %v3539_v6 }
 0xefe   : > { %3544 = vmatpush3.bf16.xpose.msk.msra.mxu1 %vm4062_vm2, %v3539_v6  ;;  %vm4686_vm2 = vmmov %vm4684_vm0 }
 0xf05   : > { %3354 = vmatmul.mubr.msk.f32.vlgmr.msra.gmra.mrb[10].mxu1 %vm4680_vm5, %v1959_v12  ;;  %vm4689_vm5 = vcmask 523264  }
 0xf06   : > { %3356 = vmatprep.mubr.msk.f32.mxu1 %vm4681_vm6, %v1960_v50  ;;  %vm4690_vm6 = vmmov %vm4689_vm5 }
 0xf09   : > { %3357 = vmatmul.mubr.msk.f32.gmra.mrb[12].mxu1 %vm4682_vm14, %v1961_v17  ;;  %vm4691_vm14 = vnez %v4628_v47 }
 0xf0a   : > { %3359 = vmatprep.mubr.msk.f32.mxu1 %vm4683_vm8, %v1962_v18  ;;  %vm4692_vm8 = vmmov %vm4689_vm5 }
 0xf0d   : > { %3360 = vmatmul.mubr.msk.f32.gmra.mrb[14].mxu1 %vm4684_vm0, %v1963_v8  ;;  %vm4693_vm0 = vnez %v4630_v51 }
 0xf0e   : > { %3362 = vmatprep.mubr.msk.f32.mxu1 %vm4685_vm7, %v1964_v13  ;;  %vm4694_vm7 = vmmov %vm4689_vm5 }
 0xf11   : > { %3363 = vmatmul.mubr.msk.f32.gmra.mrb[16].mxu1 %vm4686_vm2, %v1965_v40  ;;  %vm4695_vm2 = vmmov %vm4689_vm5 }
 0xfd8   : > { %v3355_v14 = vpop.f32.mrb[10].mxu1 }
 0xfd9   : > { %v2128_v21 = vsel %vm4687_vm13, %v3355_v14, -1e+09  ;;  %v2088_v28 = vpop.f32.mrb[11].mxu1  ;;  %vm4696_vm13 = vmmov %vm4695_vm2 }
 0xfda   : > { %v2127_v31 = vsel %vm4688_vm9, %v2088_v28, -1e+09  ;;  %v2138_v19 = vsel %vm4689_vm5, %v2128_v21, -inf  ;;  %vm4697_vm9 = vmmov %vm4695_vm2 }
 0xfdb   : > { %2139 = vmax.xlane.f32.xlu0 %v2138_v19  ;;  %v2135_v33 = vsel %vm4690_vm6, %v2127_v31, -inf }
 0xfdc   : > { %2136 = vmax.xlane.f32.xlu1 %v2135_v33  ;;  %v3358_v34 = vpop.f32.mrb[12].mxu1 }
 0xfdd   : > { %v2098_v37 = vpop.f32.mrb[13].mxu1  ;;  %v2130_v23 = vsel %vm4693_vm0, %v3358_v34, -1e+09 }
 0xfde   : > { %v2129_v39 = vsel %vm4691_vm14, %v2098_v37, -1e+09  ;;  %v2144_v35 = vsel %vm4694_vm7, %v2130_v23, -inf }
 0xfdf   : > { %v2141_v44 = vsel %vm4692_vm8, %v2129_v39, -inf }
 0xfe0   : > { %2142 = vmax.xlane.f32.xlu0 %v2141_v44  ;;  %v3361_v55 = vpop.f32.mrb[14].mxu1 }
 0xfe1   : > { %v2108_v27 = vpop.f32.mrb[15].mxu1  ;;  %v2132_v46 = vsel %vm4206_vm10, %v3361_v55, -1e+09  ;;  %vm4700_vm10 = vmmov %vm4695_vm2 }
 0xfe2   : > { %v2131_v45 = vsel %vm4197_vm12, %v2108_v27, -1e+09  ;;  %v2150_v48 = vsel %vm4696_vm13, %v2132_v46, -inf  ;;  %vm4698_vm12 = vmmov %vm4695_vm2 }
 0xfe3   : > { %v2147_v3 = vsel %vm4695_vm2, %v2131_v45, -inf }
 0xfe4   : > { %2145 = vmax.xlane.f32.xlu0 %v2144_v35  ;;  %2148 = vmax.xlane.f32.xlu1 %v2147_v3  ;;  %v3364_v47 = vpop.f32.mrb[16].mxu1 }
 0xfe5   : > { %v2118_v29 = vpop.f32.mrb[17].mxu1  ;;  %v2134_v63 = vsel %vm4221_vm1, %v3364_v47, -1e+09  ;;  %vm4701_vm1 = vmmov %vm4695_vm2 }
 0xfe6   : > { %v2133_v51 = vsel %vm4215_vm4, %v2118_v29, -1e+09  ;;  %v2156_v36 = vsel %vm4698_vm12, %v2134_v63, -inf  ;;  %vm4699_vm4 = vmmov %vm4695_vm2 }
 0xfe7   : > { %v2153_v26 = vsel %vm4697_vm9, %v2133_v51, -inf  ;;  %vm4702_vm5 = vmmov %vm4701_vm1 }
 0xfe8   : > { %2151 = vmax.xlane.f32.xlu0 %v2150_v48  ;;  %2154 = vmax.xlane.f32.xlu1 %v2153_v26  ;;  %vm4703_vm6 = vmmov %vm4701_vm1 }
 0xfe9   : > { %vm4704_vm14 = vmmov %vm4701_vm1 }
 0xfea   : > { %vm4705_vm8 = vmmov %vm4701_vm1 }
 0xfeb   : > { %vm4706_vm0 = vmmov %vm4701_vm1 }
 0xfec   : > { %2157 = vmax.xlane.f32.xlu0 %v2156_v36  ;;  %v3718_v36 = vpack.i.bf16 %v4377_v58, %v4374_v57  ;;  %vm4707_vm7 = vmmov %vm4706_vm0 }
 0xfed   : > { %vm4708_vm2 = vmmov %vm4706_vm0 }
 0xfee   : > { %vm4709_vm13 = vmmov %vm4706_vm0 }
 0xfef   : > { %vm4710_vm9 = vmmov %vm4706_vm0 }
 0xff0   : > { %vm4711_vm12 = vmmov %vm4706_vm0 }
 0xff9   : > { %3699 = vrot.lane.b32.xlu1 %v4396_v25, %s3883_s23 }
0x1068   : > { %v2140_v2 = vpop.xlane.xlu0 %2139 }
0x1069   : > { %v2160_v59 = vsub.f32 %v2128_v21, %v2140_v2  ;;  %v2137_v41 = vpop.xlane.xlu1 %2136 }
0x106a   : > { %v2159_v9 = vsub.f32 %v2127_v31, %v2137_v41 }
0x106b   : > { %v2169_v60 = vmul.f32 1.442695, %v2160_v59 }
0x106c   : > { %v2167_v1 = vmul.f32 1.442695, %v2159_v9 }
0x106d   : > { %3794 = vpow2.f32 %v2169_v60  ;;  %v2143_v4 = vpop.xlane.xlu0 %2142 }
0x106e   : > { %3796 = vpow2.f32 %v2167_v1  ;;  %v2161_v7 = vsub.f32 %v2129_v39, %v2143_v4 }
0x1070   : > { %v2171_v16 = vmul.f32 1.442695, %v2161_v7 }
0x1071   : > { %v2146_v38 = vpop.xlane.xlu0 %2145  ;;  %v2149_v42 = vpop.xlane.xlu1 %2148 }
0x1072   : > { %3798 = vpow2.f32 %v2171_v16  ;;  %v2162_v11 = vsub.f32 %v2130_v23, %v2146_v38  ;;  %v2163_v6 = vsub.f32 %v2131_v45, %v2149_v42 }
0x1074   : > { %v2173_v12 = vmul.f32 1.442695, %v2162_v11  ;;  %v2175_v50 = vmul.f32 1.442695, %v2163_v6 }
0x1075   : > { %v2152_v17 = vpop.xlane.xlu0 %2151  ;;  %v2155_v25 = vpop.xlane.xlu1 %2154 }
0x1076   : > { %3800 = vpow2.f32 %v2173_v12  ;;  %v2164_v18 = vsub.f32 %v2132_v46, %v2152_v17  ;;  %v2165_v14 = vsub.f32 %v2133_v51, %v2155_v25 }
0x1077   : > { %v4466_v8 = vpop.eup %3794  ;;  %3802 = vpow2.f32 %v2175_v50 }
0x1078   : > { %v3797_v13 = vpop.eup %3796  ;;  %v2177_v40 = vmul.f32 1.442695, %v2164_v18  ;;  %v2186_v21 = vsel %vm4699_vm4, %v4466_v8, 0.0  ;;  %v2179_v44 = vmul.f32 1.442695, %v2165_v14  ;;  %vm4712_vm4 = vmmov %vm4706_vm0 }
0x1079   : > { %2187 = vadd.xlane.f32.xlu0 %v2186_v21  ;;  %v2158_v28 = vpop.xlane.xlu0 %2157  ;;  %v3700_v31 = vpop.permute.xlu1 %3699  ;;  %v2183_v19 = vsel %vm4700_vm10, %v3797_v13, 0.0  ;;  %vm4713_vm10 = vmmov %vm4706_vm0 }
0x107a   : > { %3804 = vpow2.f32 %v2177_v40  ;;  %v2166_v33 = vsub.f32 %v2134_v63, %v2158_v28  ;;  %v3702_v34 = vunpack.i.h.bf16 %v3700_v31  ;;  %v3701_v37 = vunpack.i.l.bf16 %v3700_v31  ;;  %2184 = vadd.xlane.f32.xlu1 %v2183_v19 }
0x107c   : > { %v4471_v39 = vpop.eup %3798  ;;  %v2181_v23 = vmul.f32 1.442695, %v2166_v33  ;;  %v3545_v55 = vpack.c.bf16 %v3702_v34, %v3701_v37 }
0x107d   : > { %v2189_v27 = vsel %vm4701_vm1, %v4471_v39, 0.0  ;;  %vm4714_vm1 = vmmov %vm4706_vm0 }
0x107e   : > { %3806 = vpow2.f32 %v2181_v23  ;;  %2190 = vadd.xlane.f32.xlu1 %v2189_v27  ;;  %3546 = vmatprep.subr.bf16.mxu0 %v3545_v55  ;;  %v3723_v23 = vpack.i.bf16 %v4386_v53, %v4383_v52 }
0x107f   : > { %3548 = vmatpush3.bf16.msra.mxu0 %v3545_v55  ;;  %3808 = vpow2.f32 %v2179_v44 }
0x1080   : > { %v4475_v45 = vpop.eup %3800 }
0x1081   : > { %v4477_v35 = vpop.eup %3802  ;;  %v2192_v3 = vsel %vm4702_vm5, %v4475_v45, 0.0  ;;  %vm4715_vm5 = vcmask 64512  }
0x1082   : > { %2193 = vadd.xlane.f32.xlu0 %v2192_v3  ;;  %v2195_v46 = vsel %vm4703_vm6, %v4477_v35, 0.0  ;;  %vm4716_vm6 = vmmov %vm4715_vm5 }
0x1083   : > { %2196 = vadd.xlane.f32.xlu1 %v2195_v46 }
0x1084   : > { %v4483_v47 = vpop.eup %3804 }
0x1085   : > { %v2198_v29 = vsel %vm4704_vm14, %v4483_v47, 0.0  ;;  %vm4717_vm14 = vcmask 261120  }
0x1086   : > { %2199 = vadd.xlane.f32.xlu0 %v2198_v29 }
0x1088   : > { %v4487_v51 = vpop.eup %3806 }
0x1089   : > { %v2204_v48 = vsel %vm4705_vm8, %v4487_v51, 0.0  ;;  %v3809_v26 = vpop.eup %3808  ;;  %vm4718_vm8 = vmmov %vm4717_vm14 }
0x108a   : > { %2205 = vadd.xlane.f32.xlu0 %v2204_v48  ;;  %v2201_v63 = vsel %vm4706_vm0, %v3809_v26, 0.0 }
0x108e   : > { %2202 = vadd.xlane.f32.xlu0 %v2201_v63 }
0x1094   : > { %3709 = vrot.lane.b32.xlu1 %v4409_v32, %s3883_s23 }
0x1098   : > { %3714 = vrot.lane.b32.xlu1 %v4413_v0, %s3883_s23 }
0x109c   : > { %3719 = vrot.lane.b32.xlu1 %v3718_v36, %s3884_s29 }
0x10a0   : > { %3724 = vrot.lane.b32.xlu1 %v3723_v23, %s3884_s29 }
0x10a4   : > { %3704 = vrot.lane.b32.xlu0 %v4405_v43, %s3883_s23 }
0x1106   : > { %v2188_v59 = vpop.xlane.xlu0 %2187 }
0x1107   : > { %v2185_v2 = vpop.xlane.xlu1 %2184 }
0x1108   : > { %3810 = vrcp.f32 %v2185_v2 }
0x1109   : > { %3812 = vrcp.f32 %v2188_v59 }
0x110b   : > { %v2191_v41 = vpop.xlane.xlu1 %2190 }
0x110c   : > { %3814 = vrcp.f32 %v2191_v41 }
0x110f   : > { %v2194_v9 = vpop.xlane.xlu0 %2193 }
0x1110   : > { %v2197_v32 = vpop.xlane.xlu1 %2196  ;;  %3816 = vrcp.f32 %v2194_v9 }
0x1111   : > { %3818 = vrcp.f32 %v2197_v32 }
0x1112   : > { %v3811_v60 = vpop.eup %3810 }
0x1113   : > { %v2200_v1 = vpop.xlane.xlu0 %2199  ;;  %v2208_v4 = vmul.f32 %v3811_v60, %v3797_v13  ;;  %v3813_v18 = vpop.eup %3812 }
0x1114   : > { %v3710_v7 = vpop.permute.xlu1 %3709  ;;  %3820 = vrcp.f32 %v2200_v1  ;;  %v2210_v40 = vmul.f32 %v3813_v18, %v4466_v8 }
0x1115   : > { %3381 = vmatprep.mubr.msk.f32.mxu0 %vm4707_vm7, %v2208_v4  ;;  %v3712_v38 = vunpack.i.h.bf16 %v3710_v7  ;;  %v3711_v42 = vunpack.i.l.bf16 %v3710_v7 }
0x1116   : > { %v3815_v13 = vpop.eup %3814 }
0x1117   : > { %v2206_v0 = vpop.xlane.xlu0 %2205  ;;  %v3553_v12 = vpack.c.bf16 %v3712_v38, %v3711_v42  ;;  %v2212_v21 = vmul.f32 %v3815_v13, %v4471_v39  ;;  %v2508_v42 = vrot.slane %v4369_v49, %v3967_v22  ;;  %v2540_v22 = vrot.slane %v4369_v49, %v1586_v10  ;;  %v3052_v10 = vld [vmem:[%s4009_s24 + $0x48] sm:$0xff] }
0x1118   : > { %v3715_v11 = vpop.permute.xlu1 %3714 }
0x1119   : > { %v3717_v50 = vunpack.i.h.bf16 %v3715_v11  ;;  %v3716_v17 = vunpack.i.l.bf16 %v3715_v11 }
0x111a   : > { %v3817_v14 = vpop.eup %3816 }
0x111b   : > { %v2203_v16 = vpop.xlane.xlu0 %2202  ;;  %v3557_v25 = vpack.c.bf16 %v3717_v50, %v3716_v17  ;;  %v3819_v28 = vpop.eup %3818  ;;  %v2214_v31 = vmul.f32 %v3817_v14, %v4475_v45 }
0x111c   : > { %3822 = vrcp.f32 %v2203_v16  ;;  %v2216_v33 = vmul.f32 %v3819_v28, %v4477_v35  ;;  %v3720_v55 = vpop.permute.xlu1 %3719 }
0x111d   : > { %3824 = vrcp.f32 %v2206_v0  ;;  %v3722_v27 = vunpack.i.h.bf16 %v3720_v55  ;;  %v3721_v45 = vunpack.i.l.bf16 %v3720_v55 }
0x111e   : > { %v3821_v19 = vpop.eup %3820 }
0x111f   : > { %v3705_v43 = vpop.permute.xlu0 %3704  ;;  %v2218_v8 = vmul.f32 %v3821_v19, %v4483_v47  ;;  %v3561_v35 = vpack.c.bf16 %v3722_v27, %v3721_v45 }
0x1120   : > { %v3707_v57 = vunpack.i.h.bf16 %v3705_v43  ;;  %v3706_v58 = vunpack.i.l.bf16 %v3705_v43  ;;  %v3725_v3 = vpop.permute.xlu1 %3724 }
0x1121   : > { %v3727_v46 = vunpack.i.h.bf16 %v3725_v3  ;;  %v3726_v47 = vunpack.i.l.bf16 %v3725_v3 }
0x1122   : > { %v3549_v6 = vpack.c.bf16 %v3707_v57, %v3706_v58 }
0x1123   : > { %v3565_v29 = vpack.c.bf16 %v3727_v46, %v3726_v47 }
0x1124   : > { %3550 = vmatprep.subr.bf16.mxu0 %v3549_v6 }
0x1125   : > { %3552 = vmatpush3.bf16.msra.mxu0 %v3549_v6 }
0x1126   : > { %3554 = vmatprep.subr.bf16.mxu0 %v3553_v12  ;;  %v3823_v34 = vpop.eup %3822 }
0x1127   : > { %v3825_v37 = vpop.eup %3824  ;;  %v2220_v44 = vmul.f32 %v3823_v34, %v3809_v26 }
0x1128   : > { %v2222_v39 = vmul.f32 %v3825_v37, %v4487_v51  ;;  %v3056_v37 = vld [vmem:[%s4009_s24 + $0x68] sm:$0xff] }
0x1129   : > { %3556 = vmatpush3.bf16.msra.mxu0 %v3553_v12 }
0x112a   : > { %3558 = vmatprep.subr.bf16.mxu0 %v3557_v25 }
0x112d   : > { %3560 = vmatpush3.bf16.msra.mxu0 %v3557_v25 }
0x112e   : > { %3562 = vmatprep.subr.bf16.mxu0 %v3561_v35 }
0x1130   : > { %3382 = vmatmul.mubr.msk.f32.vlgmr.msra.gmra.mrb[16].mxu0 %vm4708_vm2, %v2210_v40 }
0x1131   : > { %3384 = vmatprep.mubr.msk.f32.mxu0 %vm4709_vm13, %v2212_v21  ;;  %3564 = vmatpush3.bf16.msra.mxu0 %v3561_v35 }
0x1132   : > { %3566 = vmatprep.subr.bf16.mxu0 %v3565_v29 }
0x1134   : > { %3385 = vmatmul.mubr.msk.f32.gmra.mrb[18].mxu0 %vm4710_vm9, %v2214_v31  ;;  %vm4726_vm9 = vmmov %vm4714_vm1 }
0x1135   : > { %3387 = vmatprep.mubr.msk.f32.mxu0 %vm4711_vm12, %v2216_v33  ;;  %3568 = vmatpush3.bf16.msra.mxu0 %v3565_v29  ;;  %v3054_v33 = vld [vmem:[%s4009_s24 + $0x58] sm:$0xff] }
0x1136   : > { %v3728_v34 = vpack.i.bf16 %v3054_v33, %v3052_v10 }
0x1138   : > { %3388 = vmatmul.mubr.msk.f32.gmra.mrb[20].mxu0 %vm4712_vm4, %v2218_v8  ;;  %v3569_v8 = vpack.c.bf16 %v3054_v33, %v3052_v10 }
0x1139   : > { %3390 = vmatprep.mubr.msk.f32.mxu0 %vm4713_vm10, %v2220_v44  ;;  %v3058_v44 = vld [vmem:[%s4009_s24 + $0x78] sm:$0xff]  ;;  %s2757_s24 = sld [smem:[#allocation3]] }
0x113a   : > { %3570 = vmatprep.subr.bf16.mxu0 %v3569_v8  ;;  %v3733_v23 = vpack.i.bf16 %v3058_v44, %v3056_v37 }
0x113c   : > { %3391 = vmatmul.mubr.msk.f32.gmra.mrb[22].mxu0 %vm4714_vm1, %v2222_v39  ;;  %v3573_v39 = vpack.c.bf16 %v3058_v44, %v3056_v37 }
0x113f   : > { %s2758_s26 = smul.u32 %s2757_s24, %s4090_s0 }
0x1203   : > { %v3383_v51 = vpop.f32.mrb[16].mxu0 }
0x1204   : > { %v2337_v48 = vpop.f32.mrb[17].mxu0 }
0x1207   : > { %v3386_v26 = vpop.f32.mrb[18].mxu0 }
0x1208   : > { %2380 = vrot.lane.b32.xlu0 %v3386_v26, %s3885_s30  ;;  %v2347_v52 = vpop.f32.mrb[19].mxu0 }
0x1209   : > { %2378 = vrot.lane.b32.xlu1 %v2347_v52, %s3885_s30 }
0x120b   : > { %v3389_v53 = vpop.f32.mrb[20].mxu0 }
0x120c   : > { %2388 = vrot.lane.b32.xlu0 %v3389_v53, %s3886_s8  ;;  %v2357_v63 = vpop.f32.mrb[21].mxu0 }
0x120d   : > { %2386 = vrot.lane.b32.xlu1 %v2357_v63, %s3886_s8 }
0x120f   : > { %v3392_v36 = vpop.f32.mrb[22].mxu0 }
0x1210   : > { %2396 = vrot.lane.b32.xlu0 %v3392_v36, %s3887_s9  ;;  %v2367_v2 = vpop.f32.mrb[23].mxu0 }
0x1211   : > { %2394 = vrot.lane.b32.xlu1 %v2367_v2, %s3887_s9 }
0x127a   : > { %v2381_v59 = vpop.permute.xlu0 %2380 }
0x127b   : > { %v2379_v41 = vpop.permute.xlu1 %2378  ;;  %v2401_v32 = vsel %vm4716_vm6, %v3383_v51, %v2381_v59 }
0x127c   : > { %v2400_v1 = vsel %vm4715_vm5, %v2337_v48, %v2379_v41 }
0x127e   : > { %v2389_v9 = vpop.permute.xlu0 %2388 }
0x127f   : > { %v2387_v60 = vpop.permute.xlu1 %2386  ;;  %v2403_v16 = vsel %vm1447_vm15, %v2401_v32, %v2389_v9 }
0x1280   : > { %v2402_v0 = vsel %vm1447_vm15, %v2400_v1, %v2387_v60  ;;  %vm4719_vm15 = vmmov %vm4718_vm8 }
0x1282   : > { %v2397_v4 = vpop.permute.xlu0 %2396 }
0x1283   : > { %v2395_v7 = vpop.permute.xlu1 %2394  ;;  %v2405_v38 = vsel %vm1450_vm3, %v2403_v16, %v2397_v4 }
0x1284   : > { %v2404_v43 = vsel %vm1450_vm3, %v2402_v0, %v2395_v7  ;;  %vm4720_vm3 = vmmov %vm4718_vm8  ;;  %v2552_v0 = vrot.slane %v4369_v49, %v3971_v24 }
0x1285   : > { %3401 = vmatprep.mubr.msk.f32.mxu0 %vm4717_vm14, %v2404_v43  ;;  %vm4721_vm0 = vmmov %vm4720_vm3 }
0x1286   : > { %3402 = vmatmul.mubr.msk.f32.vlgmr.msra.gmra.mrb[24].mxu0 %vm4718_vm8, %v2405_v38  ;;  %vm4722_vm7 = vmmov %vm4721_vm0 }
0x1287   : > { %3572 = vmatpush3.bf16.msra.mxu0 %v3569_v8  ;;  %vm4723_vm2 = vmmov %vm4721_vm0 }
0x1288   : > { %3574 = vmatprep.subr.bf16.mxu0 %v3573_v39  ;;  %vm4724_vm13 = vmmov %vm4721_vm0 }
0x1289   : > { %vm4727_vm5 = vmmov %vm4721_vm0 }
0x128a   : > { %vm4728_vm6 = vmmov %vm4721_vm0 }
0x128b   : > { %3576 = vmatpush3.bf16.msra.mxu0 %v3573_v39  ;;  %vm4729_vm14 = vmmov %vm4721_vm0 }
0x128c   : > { %vm4730_vm8 = vmmov %vm4721_vm0 }
0x1359   : > { %v3403_v57 = vpop.f32.mrb[24].mxu0 }
0x135a   : > { %v2504_v58 = vadd.f32 %v3403_v57, %v4355_v61  ;;  %v2494_v11 = vpop.f32.mrb[25].mxu0 }
0x135b   : > { %v2503_v6 = vadd.f32 %v2494_v11, %v4358_v62 }
0x135c   : > { %v4536_v12 = vadd.f32 %v2508_v42, %v2504_v58 }
0x135d   : > { %v4538_v50 = vadd.f32 %v2508_v42, %v2503_v6 }
0x135e   : > { %v2514_v17 = vsel %vm4719_vm15, %v4536_v12, 0.0  ;;  %vm2798_vm15 = vcmask 1040384  }
0x135f   : > { %2515 = vadd.xlane.f32.xlu0 %v2514_v17  ;;  %v2511_v25 = vsel %vm4720_vm3, %v4538_v50, 0.0  ;;  %vm2800_vm3 = vcmask 254976  }
0x1360   : > { %2512 = vadd.xlane.f32.xlu1 %v2511_v25 }
0x1371   : > { %2544 = vrot.lane.b32.xlu1 %v2540_v22, %s3879_s25  ;;  %s2778_s25 = smul.u32 %s3100_s20, %s4090_s0 }
0x1373   : > { %s2779_s27 = sadd.s32 8, %s2778_s25 }
0x1375   : > { %3734 = vrot.lane.b32.xlu1 %v3733_v23, %s3883_s23 }
0x13ec   : > { %v2516_v61 = vpop.xlane.xlu0 %2515 }
0x13ed   : > { %v2518_v62 = vmul.f32 0.03125, %v2516_v61  ;;  %v2513_v18 = vpop.xlane.xlu1 %2512 }
0x13ee   : > { %v2517_v13 = vmul.f32 0.03125, %v2513_v18  ;;  %v2759_v18 = vstv %s2758_s26 }
0x13ef   : > { %v2520_v40 = vsub.f32 %v4536_v12, %v2518_v62  ;;  %vm2761_vm12 = vcmp.eq.s32.totalorder %v4100_v5, %v2759_v18  ;;  %vm2760_vm10 = vcmp.eq.s32.totalorder %v3958_v20, %v2759_v18 }
0x13f0   : > { %v2519_v14 = vsub.f32 %v4538_v50, %v2517_v13  ;;  %v2780_v13 = vstv %s2779_s27 }
0x13f1   : > { %v2522_v31 = vmul.f32 %v2520_v40, %v2520_v40  ;;  %v2545_v51 = vpop.permute.xlu1 %2544  ;;  %vm2782_vm4 = vcmp.eq.s32.totalorder %v4100_v5, %v2780_v13 }
0x13f2   : > { %v2521_v21 = vmul.f32 %v2519_v14, %v2519_v14 }
0x13f3   : > { %v2526_v19 = vsel %vm4722_vm7, %v2522_v31, 0.0  ;;  %v3888_v31 = vmov 0.0   ;;  %vm4731_vm7 = vmmov %vm4723_vm2 }
0x13f4   : > { %v2523_v28 = vsel %vm4721_vm0, %v2521_v21, 0.0  ;;  %v3102_v10 = vsel %vm2782_vm4, 1.0, %v3888_v31  ;;  %v3098_v8 = vsel %vm2760_vm10, 1.0, %v3888_v31  ;;  %vm3890_vm0 = vmmov 0  }
0x13f5   : > { %2524 = vadd.xlane.f32.xlu0 %v2523_v28  ;;  %v3735_v60 = vpop.permute.xlu1 %3734 }
0x13f6   : > { %v3737_v1 = vunpack.i.h.bf16 %v3735_v60  ;;  %v3736_v4 = vunpack.i.l.bf16 %v3735_v60 }
0x13f8   : > { %v3583_v32 = vpack.c.bf16 %v3737_v1, %v3736_v4 }
0x13f9   : > { %2527 = vadd.xlane.f32.xlu0 %v2526_v19  ;;  %v3099_v19 = vsel %vm2761_vm12, 1.0, %v3888_v31 }
0x140f   : > { %3729 = vrot.lane.b32.xlu0 %v3728_v34, %s3883_s23 }
0x1482   : > { %v2525_v55 = vpop.xlane.xlu0 %2524 }
0x1483   : > { %v2529_v27 = vmul.f32 0.03125, %v2525_v55 }
0x1485   : > { %v2531_v45 = vadd.f32 1e-05, %v2529_v27 }
0x1486   : > { %v2528_v35 = vpop.xlane.xlu0 %2527 }
0x1487   : > { %3826 = vrsqrt.f32 %v2531_v45  ;;  %v2530_v3 = vmul.f32 0.03125, %v2528_v35 }
0x1489   : > { %v2532_v46 = vadd.f32 1e-05, %v2530_v3 }
0x148a   : > { %v3730_v2 = vpop.permute.xlu0 %3729 }
0x148b   : > { %3828 = vrsqrt.f32 %v2532_v46  ;;  %v3732_v59 = vunpack.i.h.bf16 %v3730_v2  ;;  %v3731_v41 = vunpack.i.l.bf16 %v3730_v2 }
0x148d   : > { %v3577_v9 = vpack.c.bf16 %v3732_v59, %v3731_v41 }
0x148f   : > { %3579 = vmatprep.subr.msk.bf16.mxu1 %vm4333_vm11, %v3577_v9 }
0x1490   : > { %3582 = vmatpush3.bf16.xpose.msk.msra.mxu1 %vm4333_vm11, %v3577_v9 }
0x1491   : > { %v3827_v47 = vpop.eup %3826  ;;  %3585 = vmatprep.subr.msk.bf16.mxu1 %vm4333_vm11, %v3583_v32 }
0x1492   : > { %v2535_v29 = vmul.f32 %v3827_v47, %v2519_v14 }
0x1494   : > { %v2541_v48 = vmul.f32 %v2540_v22, %v2535_v29 }
0x1495   : > { %v3829_v26 = vpop.eup %3828 }
0x1496   : > { %v2536_v52 = vmul.f32 %v3829_v26, %v2520_v40  ;;  %v2547_v53 = vadd.f32 %v2545_v51, %v2541_v48  ;;  %v2653_v40 = vrot.slane %v4369_v49, %v4350_v30 }
0x1498   : > { %v2542_v63 = vmul.f32 %v2540_v22, %v2536_v52  ;;  %3412 = vmatprep.mubr.msk.f32.mxu0 %vm4723_vm2, %v2547_v53  ;;  %3588 = vmatpush3.bf16.xpose.msk.msra.mxu1 %vm4333_vm11, %v3583_v32  ;;  %vm4725_vm11 = vmmov %vm4714_vm1  ;;  %vm2781_vm1 = vcmp.eq.s32.totalorder %v3958_v20, %v2780_v13  ;;  %v271_v32 = vld [vmem:[%s3963_s15] sm:$0xff]  ;;  %vm2907_vm2 = vcmask 123904  }
0x1499   : > { %v3101_v37 = vsel %vm2781_vm1, 1.0, %v3888_v31 }
0x149a   : > { %v2548_v36 = vadd.f32 %v2545_v51, %v2542_v63 }
0x149c   : > { %3413 = vmatmul.mubr.msk.f32.vlgmr.msra.gmra.mrb[26].mxu0 %vm4724_vm13, %v2548_v36 }
0x149d   : > { %3434 = vmatprep.mubr.msk.f32.mxu0 %vm3890_vm0, %v3888_v31 }
0x156f   : > { %v3414_v7 = vpop.f32.mrb[26].mxu0 }
0x1570   : > { %v2631_v16 = vadd.f32 %v3414_v7, %v2552_v0  ;;  %v2625_v43 = vpop.f32.mrb[27].mxu0 }
0x1571   : > { %v2626_v38 = vadd.f32 %v2625_v43, %v2552_v0  ;;  %v272_v0 = vld [vmem:[%s3963_s15 + $0x8] sm:$0xff]  ;;  %v273_v43 = vld [vmem:[%s3963_s15 + $0x10] sm:$0xff] }
0x1572   : > { %v3091_v42 = vmul.f32 -1.702, %v2631_v16  ;;  %v3590_v7 = vpack.c.bf16 %v272_v0, %v271_v32 }
0x1573   : > { %v3090_v57 = vmul.f32 -1.702, %v2626_v38 }
0x1574   : > { %v2640_v58 = vmul.f32 1.442695, %v3091_v42 }
0x1575   : > { %v2638_v11 = vmul.f32 1.442695, %v3090_v57 }
0x1576   : > { %3830 = vpow2.f32 %v2640_v58 }
0x1577   : > { %3832 = vpow2.f32 %v2638_v11 }
0x1580   : > { %v3831_v6 = vpop.eup %3830 }
0x1581   : > { %v3833_v17 = vpop.eup %3832  ;;  %v2643_v25 = vadd.f32 1.0, %v3831_v6  ;;  %v3842_v6 = vld [vmem:[%s3963_s15 + $0x20] sm:$0x1f] }
0x1582   : > { %v2642_v56 = vadd.f32 1.0, %v3833_v17  ;;  %v2817_v17 = vrot.slane %v3842_v6, %v4350_v30 }
0x1583   : > { %3834 = vrcp.f32 %v2643_v25 }
0x1584   : > { %3836 = vrcp.f32 %v2642_v56  ;;  %v2822_v56 = vrot.slane %v3842_v6, %v3998_v54 }
0x158d   : > { %v3835_v22 = vpop.eup %3834 }
0x158e   : > { %v3837_v24 = vpop.eup %3836  ;;  %v2649_v62 = vmul.f32 %v3835_v22, %v2631_v16  ;;  %v3889_v16 = vmov 0.0|0.0  }
0x158f   : > { %v2648_v61 = vmul.f32 %v3837_v24, %v2626_v38  ;;  %3589 = vmatprep.subr.bf16.mxu0 %v3889_v16  ;;  %v274_v38 = vld [vmem:[%s3963_s15 + $0x18] sm:$0xff]  ;;  %s3010_s15 = sshll.u32 %s3944_s7, 1 }
0x1590   : > { %3591 = vmatpush3.bf16.msra.mxu0 %v3590_v7  ;;  %v3593_v42 = vpack.c.bf16 %v274_v38, %v273_v43  ;;  %s267_s10 = scalar_lea.vmem %s4610_s6, %s3010_s15 }
0x1591   : > { %3423 = vmatprep.mubr.msk.f32.mxu1 %vm4725_vm11, %v2648_v61  ;;  %3592 = vmatprep.subr.bf16.mxu0 %v3889_v16 }
0x1592   : > { %3424 = vmatmul.mubr.msk.f32.vlgmr.msra.gmra.mrb[18].mxu1 %vm4726_vm9, %v2649_v62  ;;  %v2827_v62 = vrot.slane %v3842_v6, %v4033_v15 }
0x1594   : > { %3594 = vmatpush3.bf16.msra.mxu0 %v3593_v42 }
0x1665   : > { %v3425_v14 = vpop.f32.mrb[18].mxu1 }
0x1666   : > { %v2752_v21 = vadd.f32 %v3425_v14, %v2653_v40  ;;  %v2746_v28 = vpop.f32.mrb[19].mxu1 }
0x1667   : > { %v2747_v33 = vadd.f32 %v2746_v28, %v2653_v40 }
0x1668   : > { %v2756_v34 = vadd.f32 %v2752_v21, %v4536_v12 }
0x1669   : > { %v2755_v49 = vadd.f32 %v2747_v33, %v4538_v50 }
0x166a   : > { %v2767_v44 = vmul.f32 %v3099_v19, %v2756_v34  ;;  %v2788_v39 = vmul.f32 %v3102_v10, %v2756_v34 }
0x166b   : > { %v2766_v5 = vmul.f32 %v3098_v8, %v2755_v49  ;;  %v2787_v23 = vmul.f32 %v3101_v37, %v2755_v49 }
0x166c   : > { %v2769_v55 = vsel %vm4727_vm5, %v2767_v44, 0.0  ;;  %v2790_v20 = vsel %vm4728_vm6, %v2788_v39, 0.0 }
0x166d   : > { %v2768_v27 = vsel %vm4729_vm14, %v2766_v5, 0.0  ;;  %v2789_v45 = vsel %vm4730_vm8, %v2787_v23, 0.0 }
0x166e   : > { %v2770_v35 = vadd.f32 %v2769_v55, %v2768_v27  ;;  %v2791_v3 = vadd.f32 %v2790_v20, %v2789_v45 }
0x1670   : > { %v2771_v46 = vrot.slane %v2770_v35, 4  ;;  %v2792_v12 = vrot.slane %v2791_v3, 4 }
0x1672   : > { %v2772_v47 = vadd.f32 %v2771_v46, %v2770_v35  ;;  %v2793_v29 = vadd.f32 %v2792_v12, %v2791_v3 }
0x1674   : > { %v2773_v51 = vrot.slane %v2772_v47, 2  ;;  %v2794_v50 = vrot.slane %v2793_v29, 2 }
0x1676   : > { %v2774_v48 = vadd.f32 %v2773_v51, %v2772_v47  ;;  %v2795_v26 = vadd.f32 %v2794_v50, %v2793_v29 }
0x1678   : > { %v2775_v52 = vrot.slane %v2774_v48, 1  ;;  %v2796_v53 = vrot.slane %v2795_v26, 1 }
0x167a   : > { %v2776_v63 = vadd.f32 %v2775_v52, %v2774_v48  ;;  %v2797_v36 = vadd.f32 %v2796_v53, %v2795_v26 }
0x167c   : > { %v2799_v2 = vsel %vm2798_vm15, %v2776_v63, %v2797_v36 }
0x167d   : > { %v2801_v59 = vsel %vm2800_vm3, %v2799_v2, 0.0 }
0x167e   : > { %2802 = vadd.xlane.f32.xlu1 %v2801_v59 }
0x170b   : > { %v2803_v41 = vpop.xlane.xlu1 %2802 }
0x170c   : > { %v2804_v9 = vmul.f32 0.03125, %v2803_v41 }
0x170e   : > { %v2805_v60 = vsub.f32 %v2799_v2, %v2804_v9 }
0x1710   : > { %v2806_v1 = vmul.f32 %v2805_v60, %v2805_v60 }
0x1712   : > { %v2807_v4 = vsel %vm2800_vm3, %v2806_v1, 0.0 }
0x1713   : > { %2808 = vadd.xlane.f32.xlu0 %v2807_v4 }
0x17a0   : > { %v2809_v57 = vpop.xlane.xlu0 %2808 }
0x17a1   : > { %v2810_v58 = vmul.f32 0.03125, %v2809_v57 }
0x17a3   : > { %v2811_v11 = vadd.f32 1e-05, %v2810_v58 }
0x17a5   : > { %3838 = vrsqrt.f32 %v2811_v11 }
0x17af   : > { %v3839_v25 = vpop.eup %3838 }
0x17b0   : > { %v2813_v22 = vmul.f32 %v3839_v25, %v2805_v60 }
0x17b2   : > { %v2818_v24 = vmul.f32 %v2817_v17, %v2813_v22 }
0x17b4   : > { %v2823_v61 = vadd.f32 %v2822_v56, %v2818_v24 }
0x17b6   : > { %3435 = vmatmul.mubr.msk.f32.vlgmr.msra.gmra.mrb[28].mxu0 %vm4731_vm7, %v2823_v61 }
0x1889   : > { %v2897_v18 = vpop.f32.mrb[28].mxu0 }
0x188a   : > { %v2898_v13 = vadd.f32 %v2897_v18, %v2827_v62  ;;  %v3436_v40 = vpop.f32.mrb[29].mxu0 }
0x188c   : > { %v2901_v14 = vmul.f32 %v2898_v13, %v2898_v13 }
0x188e   : > { %v2902_v21 = vsel %vm2800_vm3, %v2901_v14, 0.0 }
0x188f   : > { %2903 = vadd.xlane.f32.xlu0 %v2902_v21 }
0x191c   : > { %v2904_v28 = vpop.xlane.xlu0 %2903 }
0x191d   : > { %3840 = vrsqrt.f32 %v2904_v28 }
0x1927   : > { %v3841_v30 = vpop.eup %3840 }
0x1928   : > { %v2906_v54 = vmul.f32 %v3841_v30, %v2898_v13 }
0x192a   : > { %2908 = vst.msk [vmem:[%s267_s10] sm:$0x3] %vm2907_vm2, %v2906_v54 }
0x192b PF: > { %s26_s1 = sadd.s32 1, %s3875_s1  }
0x192c   : > { %p23_p1 = scmp.ge.s32.totalorder %s26_s1, 4  }
0x192e   :  { %25 = sbr.rel (!%p23_p1) target bundleno = 26 (0x1a), region = 77 }

</bundles_post_ra>
